<compile_context>
chip_gen: v7x
topology: tpu7x:2x2x1
jax: 0.10.0
libtpu: 0.0.40
codegen_flags: <defaults>
</compile_context>

<pallas_src>
import math

import numpy as np
import jax
import jax.numpy as jnp
from jax.experimental import pallas as pl
from jax.experimental.pallas import tpu as pltpu

EMBED_DIM = 8
N_DENSE = 5
N_SPARSE = 15
N_VEC = 16
RAW_DIM = N_DENSE + N_SPARSE + N_VEC              # 36 raw input columns
FEA_NUM = N_DENSE + N_SPARSE * EMBED_DIM + N_VEC  # 141 assembled features
HIDDEN_UNITS = [FEA_NUM, 128, 64]                 # hidden_units with fea_num inserted


def deepfm_kernel(scal_ref, x_ref, offs_ref, sel_ref,
                  wefm_ref, wrfm_ref, sdv_ref,
                  wednn_ref, wrdnn_ref, db1_ref, dw2_ref, db2_ref, wft_ref,
                  out_ref):
    """One batch tile of DeepFM directly on the raw features.

    x_ref     : (tb, 36)  raw [dense(5) | sparse ids(15) | vec(16)], stream dtype
    offs_ref  : (1, 36)   f32 global-vocab offset per raw id column (0 elsewhere)
    sel_ref   : (36, V)   f32 0/1 selector mapping each raw id column to its vocab rows
    wefm_ref  : (V, 10)   f32 FM weights folded through the embedding tables:
                          cols 0:8 = T @ (sqrt(.5)*w2), col 8 = T @ w1,
                          col 9 = -0.5 * (T*T) @ rowsum_k(w2^2)
    wrfm_ref  : (36, 10)  f32 FM weights for the dense/vec raw columns (id rows = 0)
    sdv_ref   : (1, 36)   f32 -0.5 * rowsum_k(w2^2) for dense/vec raw columns
    wednn_ref : (V, 128)  T @ dW1 (embedding rows), stream dtype
    wrdnn_ref : (36, 128) dW1 rows for dense/vec raw columns (id rows = 0), stream dtype
    """
    x = x_ref[...]                               # (tb, 36)
    xf = x.astype(jnp.float32)                   # elementwise / FM math always f32

    # ---- in-kernel embedding lookup: multi-hot(ids) built with one tiny MXU
    #      pass + one VPU compare (exact: ids and offsets are small ints) ----
    gidx = jnp.dot(xf + offs_ref[...], sel_ref[...],
                   preferred_element_type=jnp.float32)            # (tb, V) exact ints
    col = jax.lax.broadcasted_iota(jnp.int32, gidx.shape, 1)
    m_f32 = (gidx.astype(jnp.int32) == col).astype(jnp.float32)   # multi-hot (tb, V)
    m_mm = m_f32.astype(x.dtype)

    # ---- FM wide part (kept entirely in f32: second order is a near-cancelling
    #      difference, per the review's correctness concern) ----
    fm = jnp.dot(m_f32, wefm_ref[...], preferred_element_type=jnp.float32)
    fm = fm + jnp.dot(xf, wrfm_ref[...], preferred_element_type=jnp.float32)  # (tb, 10)
    lane = jax.lax.broadcasted_iota(jnp.int32, fm.shape, 1)
    # lanes 0..7: 0.5*(x@w2_k)^2 (sqrt(.5) folded into weights); lanes 8,9: linear
    fm_terms = jnp.where(lane < 8, fm * fm, fm)
    # dense/vec part of -0.5 * x^2 @ rowsum(w2^2): cheap VPU multiply + lane reduce
    x2dv = jnp.sum((xf * xf) * sdv_ref[...], axis=-1, keepdims=True)
    wide = scal_ref[0] + x2dv + jnp.sum(fm_terms, axis=-1, keepdims=True)      # (tb, 1)

    # ---- DNN deep part (matmuls in the streamed dtype, f32 accumulate; the
    #      dnn_dropout of the config is 0.0 -> identity) ----
    h1 = jnp.dot(m_mm, wednn_ref[...], preferred_element_type=jnp.float32)
    h1 = h1 + jnp.dot(x, wrdnn_ref[...], preferred_element_type=jnp.float32)
    h1 = jnp.maximum(h1 + db1_ref[...], 0.0)                                   # (tb, 128)
    h2 = jnp.dot(h1.astype(dw2_ref.dtype), dw2_ref[...],
                 preferred_element_type=jnp.float32) + db2_ref[...]
    h2 = jnp.maximum(h2, 0.0)                                                  # (tb, 64)
    # final (64 -> 1) linear as a VPU multiply + lane reduce (avoids N=1 MXU pass)
    deep = jnp.sum(h2 * wft_ref[...], axis=-1, keepdims=True) + scal_ref[1]

    # NOTE: output kept as a (tb, 1) f32 column: it is <3% of the HBM traffic
    # even after the x-stream cuts, so the (tb,1)->(1,tb) relayout a lane-dense
    # store would need was judged not worth the lowering risk.
    out_ref[...] = (wide + deep).astype(out_ref.dtype)


def _fold_weights(params, embed_tables, mm_dtype):
    """Fold the embedding tables and FM/DNN weights into kernel-resident matrices.

    All folding is done in f32; only the DNN matmul weights are cast to the
    streamed dtype.  Feature order in x_feat is [embeds(120), dense(5), vec(16)].
    """
    (w0, w1, w2, dW1, db1, dW2, db2, wf, bf) = params
    vocab_sizes = [int(t.shape[0]) for t in embed_tables]
    V = int(sum(vocab_sizes))
    offs = np.concatenate([[0], np.cumsum(vocab_sizes)[:-1]]).astype(np.int64)

    if jnp.dtype(mm_dtype) != jnp.dtype(jnp.float32):
        # ids must stay exact in the streamed dtype (bf16 integers are exact < 256)
        assert V <= 256, "bf16 streaming needs total vocab <= 256; use float32"
    # TODO(synk): very large vocabularies (e.g. raw JobID/UserID) would need a
    # DMA-gather lookup path instead of the one-hot matmul used here.

    n_emb = N_SPARSE * EMBED_DIM  # 120 embedding-derived features

    # stacked block-diagonal embedding table T: (V, 120); selector/offsets for ids
    T = jnp.zeros((V, n_emb), jnp.float32)
    sel = np.zeros((RAW_DIM, V), np.float32)
    offs_row = np.zeros((1, RAW_DIM), np.float32)
    for i, (v, o) in enumerate(zip(vocab_sizes, offs)):
        v, o = int(v), int(o)
        T = T.at[o:o + v, i * EMBED_DIM:(i + 1) * EMBED_DIM].set(
            embed_tables[i].astype(jnp.float32))
        sel[N_DENSE + i, o:o + v] = 1.0
        offs_row[0, N_DENSE + i] = float(o)

    def split(w):  # feature rows -> (embedding rows, dense+vec rows)
        w = w.astype(jnp.float32)
        return w[:n_emb], w[n_emb:]

    w1_e, w1_dv = split(w1)
    w2_e, w2_dv = split(w2)
    dW1_e, dW1_dv = split(dW1)

    def to_raw(w_dv):
        """Scatter dense/vec feature rows (21, n) to raw-column rows (36, n)."""
        out = jnp.zeros((RAW_DIM,) + w_dv.shape[1:], jnp.float32)
        out = out.at[:N_DENSE].set(w_dv[:N_DENSE])
        out = out.at[N_DENSE + N_SPARSE:].set(w_dv[N_DENSE:])
        return out

    c = float(np.sqrt(0.5))
    w2sq_rs_e = jnp.sum(w2_e * w2_e, axis=1, keepdims=True)    # (120, 1)
    w2sq_rs_dv = jnp.sum(w2_dv * w2_dv, axis=1, keepdims=True)  # (21, 1)

    # FM block (10 f32 columns): [sqrt(.5)*w2 (8) | w1 | -0.5 * x^2-path (embeds only)]
    wefm = jnp.concatenate(
        [T @ (c * w2_e), T @ w1_e, -0.5 * ((T * T) @ w2sq_rs_e)], axis=1)      # (V, 10)
    wrfm = to_raw(jnp.concatenate(
        [c * w2_dv, w1_dv, jnp.zeros_like(w1_dv)], axis=1))                    # (36, 10)
    sdv = to_raw(-0.5 * w2sq_rs_dv).reshape(1, RAW_DIM)                        # (1, 36)

    # DNN layer-1 weights folded through the tables (streamed dtype)
    wednn = (T @ dW1_e).astype(mm_dtype)        # (V, 128)
    wrdnn = to_raw(dW1_dv).astype(mm_dtype)     # (36, 128)

    db1f = db1.reshape(1, -1).astype(jnp.float32)
    dw2m = dW2.astype(mm_dtype)
    db2f = db2.reshape(1, -1).astype(jnp.float32)
    wft = wf.reshape(1, -1).astype(jnp.float32)
    scal = jnp.concatenate(
        [jnp.reshape(w0, (-1,)), jnp.reshape(bf, (-1,))]).astype(jnp.float32)  # [w0, bf]

    return (scal, jnp.asarray(offs_row), jnp.asarray(sel), wefm, wrfm, sdv,
            wednn, wrdnn, db1f, dw2m, db2f, wft)


def deepfm_pallas(x_raw, params, embed_tables, *, tb=1024, mm_dtype=jnp.bfloat16):
    """DeepFM forward.  x_raw: (B, 36) = [dense(5) | sparse ids(15) | vec(16)] -> (B,).

    mm_dtype controls the HBM-streamed x dtype and the DNN matmul dtype (bf16
    default: the kernel is HBM-bound and every TPU MXU generation is
    bf16-native).  FM wide math and all accumulation stay f32.
    """
    B, F = x_raw.shape
    assert F == RAW_DIM
    (scal, offs_row, sel, wefm, wrfm, sdv,
     wednn, wrdnn, db1f, dw2m, db2f, wft) = _fold_weights(params, embed_tables, mm_dtype)

    # Batch tiling: large tiles to reach the HBM roofline, but keep >= 2 grid
    # steps when possible so the "parallel" batch axis shards across v7x's 2 TCs.
    tb = max(8, (min(tb, 4096) // 8) * 8)
    half = (((B + 1) // 2) + 7) // 8 * 8
    tb = min(tb, max(8, half))
    n_tiles = pl.cdiv(B, tb)
    b_pad = n_tiles * tb

    x = x_raw.astype(mm_dtype)        # ids (< 256) stay exact even in bf16
    if b_pad != B:
        x = jnp.pad(x, ((0, b_pad - B), (0, 0)))   # padded rows sliced off below

    const2d = lambda a: pl.BlockSpec(a.shape, lambda i: (0, 0))  # VMEM-resident weights

    out = pl.pallas_call(
        deepfm_kernel,
        out_shape=jax.ShapeDtypeStruct((b_pad, 1), jnp.float32),
        grid=(n_tiles,),
        in_specs=[
            pl.BlockSpec(memory_space=pltpu.MemorySpace.SMEM),   # [w0, bf] scalars
            # The only HBM-streamed operand.  Default double-buffering; a
            # pl.Buffered(3) depth is deferred pending a profile showing the
            # x DMA exposed (review item was conditional).
            pl.BlockSpec((tb, RAW_DIM), lambda i: (i, 0)),
            const2d(offs_row), const2d(sel),
            const2d(wefm), const2d(wrfm), const2d(sdv),
            const2d(wednn), const2d(wrdnn),
            const2d(db1f), const2d(dw2m), const2d(db2f), const2d(wft),
        ],
        out_specs=pl.BlockSpec((tb, 1), lambda i: (i, 0)),
        compiler_params=pltpu.CompilerParams(
            dimension_semantics=("parallel",)),
    )(scal, x, offs_row, sel, wefm, wrfm, sdv,
      wednn, wrdnn, db1f, dw2m, db2f, wft)
    return out[:B, 0]                                            # .squeeze()


# ---------------------------- pure-JAX reference ----------------------------

def assemble_features(x_raw, embed_tables):
    """Mirror DeepFM.forward slicing / embedding / concat (reference only)."""
    dense = x_raw[:, :N_DENSE]
    ids = x_raw[:, N_DENSE:N_DENSE + N_SPARSE].astype(jnp.int32)
    vec = x_raw[:, N_DENSE + N_SPARSE:]
    embeds = jnp.concatenate([embed_tables[i][ids[:, i]] for i in range(N_SPARSE)],
                             axis=-1)                             # (B, 120)
    return jnp.concatenate([embeds, dense, vec], axis=-1)         # (B, 141)


def deepfm_reference(x_raw, params, embed_tables):
    """Pure-f32 mirror of the PyTorch DeepFM forward."""
    (w0, w1, w2, dW1, db1, dW2, db2, wf, bf) = params
    x = assemble_features(x_raw, embed_tables).astype(jnp.float32)
    first = w0.reshape(()) + x @ w1
    second = 0.5 * jnp.sum((x @ w2) ** 2 - (x ** 2) @ (w2 ** 2), axis=1, keepdims=True)
    wide = first + second
    h = jnp.maximum(x @ dW1 + db1.reshape(1, -1), 0.0)
    h = jnp.maximum(h @ dW2 + db2.reshape(1, -1), 0.0)
    deep = h @ wf + bf.reshape(1, 1)
    return (wide + deep)[:, 0]


def init_params(key):
    ks = jax.random.split(key, 6)
    # FM params (w0 zeros, w1/w2 ~ U[0,1) like torch.rand)
    w0 = jnp.zeros((1, 1), jnp.float32)
    w1 = jax.random.uniform(ks[0], (FEA_NUM, 1), jnp.float32)
    w2 = jax.random.uniform(ks[1], (FEA_NUM, EMBED_DIM), jnp.float32)

    def lin(k, din, dout):
        kw, kb = jax.random.split(k)
        bound = 1.0 / math.sqrt(din)
        W = jax.random.uniform(kw, (din, dout), jnp.float32, -bound, bound)
        b = jax.random.uniform(kb, (1, dout), jnp.float32, -bound, bound)
        return W, b

    dW1, db1 = lin(ks[2], HIDDEN_UNITS[0], HIDDEN_UNITS[1])
    dW2, db2 = lin(ks[3], HIDDEN_UNITS[1], HIDDEN_UNITS[2])
    wf, bf = lin(ks[4], HIDDEN_UNITS[2], 1)
    vocab_sizes = [20, 5, 6, 4, 3, 10, 30, 8, 4, 3, 3, 3, 50, 2, 12]
    embed_tables = [jax.random.normal(jax.random.fold_in(ks[5], i), (v, EMBED_DIM),
                                      jnp.float32) for i, v in enumerate(vocab_sizes)]
    return (w0, w1, w2, dW1, db1, dW2, db2, wf, bf), embed_tables, vocab_sizes


if __name__ == "__main__":
    key = jax.random.PRNGKey(0)
    k_params, k_dense, k_sparse, k_vec = jax.random.split(key, 4)
    params, embed_tables, vocab_sizes = init_params(k_params)

    # B deliberately NOT a power of two / tile multiple -> exercises row padding
    # and the >=2-tile (v7x 2-TC) grid split.
    B = 400
    dense = jax.random.normal(k_dense, (B, N_DENSE), jnp.float32)
    sparse_ids = jnp.stack(
        [jax.random.randint(jax.random.fold_in(k_sparse, i), (B,), 0, v)
         for i, v in enumerate(vocab_sizes)], axis=1).astype(jnp.float32)
    vec = jax.random.normal(k_vec, (B, N_VEC), jnp.float32)
    x_raw = jnp.concatenate([dense, sparse_ids, vec], axis=-1)    # (B, 36)

    ref = deepfm_reference(x_raw, params, embed_tables)
    scale = jnp.maximum(jnp.max(jnp.abs(ref)), 1.0)

    # f32 streamed path -- primary (tight) correctness gate
    out_f32 = jax.block_until_ready(
        deepfm_pallas(x_raw, params, embed_tables, mm_dtype=jnp.float32))
    assert out_f32.shape == (B,)
    err_f32 = float(jnp.max(jnp.abs(out_f32 - ref)) / scale)
    assert err_f32 < 1e-3, err_f32

    # bf16 streamed path (default): halves the HBM x stream; FM math stays f32,
    # so only the dense/vec input rounding + bf16 DNN matmuls differ from f32.
    out_bf16 = jax.block_until_ready(deepfm_pallas(x_raw, params, embed_tables))
    assert out_bf16.shape == (B,)
    err_bf16 = float(jnp.max(jnp.abs(out_bf16 - ref)) / scale)
    assert err_bf16 < 3e-2, err_bf16

    print("KERNEL_OK")
</pallas_src>

<mosaic_0001>
module attributes {stable_mosaic.version = 11 : i64} {
  func.func @deepfm_kernel(%arg0: i32, %arg1: memref<2xf32, #tpu.memory_space<smem>>, %arg2: memref<200x36xf32, #tpu.memory_space<vmem>>, %arg3: memref<1x36xf32, #tpu.memory_space<vmem>>, %arg4: memref<36x163xf32, #tpu.memory_space<vmem>>, %arg5: memref<163x10xf32, #tpu.memory_space<vmem>>, %arg6: memref<36x10xf32, #tpu.memory_space<vmem>>, %arg7: memref<1x36xf32, #tpu.memory_space<vmem>>, %arg8: memref<163x128xf32, #tpu.memory_space<vmem>>, %arg9: memref<36x128xf32, #tpu.memory_space<vmem>>, %arg10: memref<1x128xf32, #tpu.memory_space<vmem>>, %arg11: memref<128x64xf32, #tpu.memory_space<vmem>>, %arg12: memref<1x64xf32, #tpu.memory_space<vmem>>, %arg13: memref<1x64xf32, #tpu.memory_space<vmem>>, %arg14: memref<200x1xf32, #tpu.memory_space<vmem>>) attributes {dimension_semantics = [#tpu.dimension_semantics<parallel>], iteration_bounds = array<i64: 2>, scalar_prefetch = 0 : i64, scratch_operands = 0 : i64, tpu.core_type = #tpu.core_type<tc>, window_params = [{transform_indices = @transform_0, window_bounds = array<i64: 2>}, {transform_indices = @transform_1, window_bounds = array<i64: 200, 36>}, {pipeline_mode = #tpu.pipeline_mode<synchronous>, transform_indices = @transform_2, window_bounds = array<i64: 1, 36>}, {pipeline_mode = #tpu.pipeline_mode<synchronous>, transform_indices = @transform_3, window_bounds = array<i64: 36, 163>}, {pipeline_mode = #tpu.pipeline_mode<synchronous>, transform_indices = @transform_4, window_bounds = array<i64: 163, 10>}, {pipeline_mode = #tpu.pipeline_mode<synchronous>, transform_indices = @transform_5, window_bounds = array<i64: 36, 10>}, {pipeline_mode = #tpu.pipeline_mode<synchronous>, transform_indices = @transform_6, window_bounds = array<i64: 1, 36>}, {pipeline_mode = #tpu.pipeline_mode<synchronous>, transform_indices = @transform_7, window_bounds = array<i64: 163, 128>}, {pipeline_mode = #tpu.pipeline_mode<synchronous>, transform_indices = @transform_8, window_bounds = array<i64: 36, 128>}, {pipeline_mode = #tpu.pipeline_mode<synchronous>, transform_indices = @transform_9, window_bounds = array<i64: 1, 128>}, {pipeline_mode = #tpu.pipeline_mode<synchronous>, transform_indices = @transform_10, window_bounds = array<i64: 128, 64>}, {pipeline_mode = #tpu.pipeline_mode<synchronous>, transform_indices = @transform_11, window_bounds = array<i64: 1, 64>}, {pipeline_mode = #tpu.pipeline_mode<synchronous>, transform_indices = @transform_12, window_bounds = array<i64: 1, 64>}, {transform_indices = @transform_13, window_bounds = array<i64: 200, 1>}]} {
    %c0 = arith.constant 0 : index
    %c0_0 = arith.constant 0 : index
    %0 = vector.load %arg2[%c0, %c0_0] : memref<200x36xf32, #tpu.memory_space<vmem>>, vector<200x36xf32>
    %c0_1 = arith.constant 0 : index
    %c0_2 = arith.constant 0 : index
    %1 = vector.load %arg3[%c0_1, %c0_2] : memref<1x36xf32, #tpu.memory_space<vmem>>, vector<1x36xf32>
    %2 = vector.broadcast %1 : vector<1x36xf32> to vector<200x36xf32>
    %3 = arith.addf %0, %2 : vector<200x36xf32>
    %c0_3 = arith.constant 0 : index
    %c0_4 = arith.constant 0 : index
    %4 = vector.load %arg4[%c0_3, %c0_4] : memref<36x163xf32, #tpu.memory_space<vmem>>, vector<36x163xf32>
    %cst = arith.constant dense<0.000000e+00> : vector<200x163xf32>
    %5 = tpu.matmul %3, %4, %cst {dimension_numbers = #tpu.dot_dimension_numbers<[1], [0], [0], [1], [0, 0, 1, 1], [], []>} : vector<200x36xf32>, vector<36x163xf32>, vector<200x163xf32> -> vector<200x163xf32>
    %6 = tpu.iota {dimensions = array<i32: 1>} : vector<200x163xi32>
    %7 = arith.fptosi %5 : vector<200x163xf32> to vector<200x163xi32>
    %8 = arith.cmpi eq, %7, %6 : vector<200x163xi32>
    %9 = arith.extui %8 : vector<200x163xi1> to vector<200x163xi32>
    %10 = arith.sitofp %9 : vector<200x163xi32> to vector<200x163xf32>
    %c0_5 = arith.constant 0 : index
    %c0_6 = arith.constant 0 : index
    %11 = vector.load %arg5[%c0_5, %c0_6] : memref<163x10xf32, #tpu.memory_space<vmem>>, vector<163x10xf32>
    %cst_7 = arith.constant dense<0.000000e+00> : vector<200x10xf32>
    %12 = tpu.matmul %10, %11, %cst_7 {dimension_numbers = #tpu.dot_dimension_numbers<[1], [0], [0], [1], [0, 0, 1, 1], [], []>} : vector<200x163xf32>, vector<163x10xf32>, vector<200x10xf32> -> vector<200x10xf32>
    %c0_8 = arith.constant 0 : index
    %c0_9 = arith.constant 0 : index
    %13 = vector.load %arg6[%c0_8, %c0_9] : memref<36x10xf32, #tpu.memory_space<vmem>>, vector<36x10xf32>
    %cst_10 = arith.constant dense<0.000000e+00> : vector<200x10xf32>
    %14 = tpu.matmul %0, %13, %cst_10 {dimension_numbers = #tpu.dot_dimension_numbers<[1], [0], [0], [1], [0, 0, 1, 1], [], []>} : vector<200x36xf32>, vector<36x10xf32>, vector<200x10xf32> -> vector<200x10xf32>
    %15 = arith.addf %12, %14 : vector<200x10xf32>
    %16 = tpu.iota {dimensions = array<i32: 1>} : vector<200x10xi32>
    %c8_i32 = arith.constant 8 : i32
    %17 = vector.broadcast %c8_i32 : i32 to vector<200x10xi32>
    %18 = arith.cmpi slt, %16, %17 : vector<200x10xi32>
    %19 = arith.mulf %15, %15 : vector<200x10xf32>
    %20 = arith.select %18, %19, %15 : vector<200x10xi1>, vector<200x10xf32>
    %21 = arith.mulf %0, %0 : vector<200x36xf32>
    %c0_11 = arith.constant 0 : index
    %c0_12 = arith.constant 0 : index
    %22 = vector.load %arg7[%c0_11, %c0_12] : memref<1x36xf32, #tpu.memory_space<vmem>>, vector<1x36xf32>
    %23 = vector.broadcast %22 : vector<1x36xf32> to vector<200x36xf32>
    %24 = arith.mulf %21, %23 : vector<200x36xf32>
    %cst_13 = arith.constant dense<0.000000e+00> : vector<200xf32>
    %25 = vector.multi_reduction <add>, %24, %cst_13 [1] : vector<200x36xf32> to vector<200xf32>
    %26 = vector.shape_cast %25 : vector<200xf32> to vector<200x1xf32>
    %c0_14 = arith.constant 0 : index
    %27 = memref.load %arg1[%c0_14] : memref<2xf32, #tpu.memory_space<smem>>
    %28 = vector.broadcast %27 : f32 to vector<200x1xf32>
    %29 = arith.addf %28, %26 : vector<200x1xf32>
    %cst_15 = arith.constant dense<0.000000e+00> : vector<200xf32>
    %30 = vector.multi_reduction <add>, %20, %cst_15 [1] : vector<200x10xf32> to vector<200xf32>
    %31 = vector.shape_cast %30 : vector<200xf32> to vector<200x1xf32>
    %32 = arith.addf %29, %31 : vector<200x1xf32>
    %c0_16 = arith.constant 0 : index
    %c0_17 = arith.constant 0 : index
    %33 = vector.load %arg8[%c0_16, %c0_17] : memref<163x128xf32, #tpu.memory_space<vmem>>, vector<163x128xf32>
    %cst_18 = arith.constant dense<0.000000e+00> : vector<200x128xf32>
    %34 = tpu.matmul %10, %33, %cst_18 {dimension_numbers = #tpu.dot_dimension_numbers<[1], [0], [0], [1], [0, 0, 1, 1], [], []>} : vector<200x163xf32>, vector<163x128xf32>, vector<200x128xf32> -> vector<200x128xf32>
    %c0_19 = arith.constant 0 : index
    %c0_20 = arith.constant 0 : index
    %35 = vector.load %arg9[%c0_19, %c0_20] : memref<36x128xf32, #tpu.memory_space<vmem>>, vector<36x128xf32>
    %cst_21 = arith.constant dense<0.000000e+00> : vector<200x128xf32>
    %36 = tpu.matmul %0, %35, %cst_21 {dimension_numbers = #tpu.dot_dimension_numbers<[1], [0], [0], [1], [0, 0, 1, 1], [], []>} : vector<200x36xf32>, vector<36x128xf32>, vector<200x128xf32> -> vector<200x128xf32>
    %37 = arith.addf %34, %36 : vector<200x128xf32>
    %c0_22 = arith.constant 0 : index
    %c0_23 = arith.constant 0 : index
    %38 = vector.load %arg10[%c0_22, %c0_23] : memref<1x128xf32, #tpu.memory_space<vmem>>, vector<1x128xf32>
    %39 = vector.broadcast %38 : vector<1x128xf32> to vector<200x128xf32>
    %40 = arith.addf %37, %39 : vector<200x128xf32>
    %cst_24 = arith.constant 0.000000e+00 : f32
    %41 = vector.broadcast %cst_24 : f32 to vector<200x128xf32>
    %42 = arith.maximumf %40, %41 : vector<200x128xf32>
    %c0_25 = arith.constant 0 : index
    %c0_26 = arith.constant 0 : index
    %43 = vector.load %arg11[%c0_25, %c0_26] : memref<128x64xf32, #tpu.memory_space<vmem>>, vector<128x64xf32>
    %cst_27 = arith.constant dense<0.000000e+00> : vector<200x64xf32>
    %44 = tpu.matmul %42, %43, %cst_27 {dimension_numbers = #tpu.dot_dimension_numbers<[1], [0], [0], [1], [0, 0, 1, 1], [], []>} : vector<200x128xf32>, vector<128x64xf32>, vector<200x64xf32> -> vector<200x64xf32>
    %c0_28 = arith.constant 0 : index
    %c0_29 = arith.constant 0 : index
    %45 = vector.load %arg12[%c0_28, %c0_29] : memref<1x64xf32, #tpu.memory_space<vmem>>, vector<1x64xf32>
    %46 = vector.broadcast %45 : vector<1x64xf32> to vector<200x64xf32>
    %47 = arith.addf %44, %46 : vector<200x64xf32>
    %cst_30 = arith.constant 0.000000e+00 : f32
    %48 = vector.broadcast %cst_30 : f32 to vector<200x64xf32>
    %49 = arith.maximumf %47, %48 : vector<200x64xf32>
    %c0_31 = arith.constant 0 : index
    %c0_32 = arith.constant 0 : index
    %50 = vector.load %arg13[%c0_31, %c0_32] : memref<1x64xf32, #tpu.memory_space<vmem>>, vector<1x64xf32>
    %51 = vector.broadcast %50 : vector<1x64xf32> to vector<200x64xf32>
    %52 = arith.mulf %49, %51 : vector<200x64xf32>
    %cst_33 = arith.constant dense<0.000000e+00> : vector<200xf32>
    %53 = vector.multi_reduction <add>, %52, %cst_33 [1] : vector<200x64xf32> to vector<200xf32>
    %54 = vector.shape_cast %53 : vector<200xf32> to vector<200x1xf32>
    %c1 = arith.constant 1 : index
    %55 = memref.load %arg1[%c1] : memref<2xf32, #tpu.memory_space<smem>>
    %56 = vector.broadcast %55 : f32 to vector<200x1xf32>
    %57 = arith.addf %54, %56 : vector<200x1xf32>
    %58 = arith.addf %32, %57 : vector<200x1xf32>
    %c0_34 = arith.constant 0 : index
    %c0_35 = arith.constant 0 : index
    %59 = vector.load %arg14[%c0_34, %c0_35] : memref<200x1xf32, #tpu.memory_space<vmem>>, vector<200x1xf32>
    tpu.vector_store %arg14[%c0_34, %c0_35], %58 {strides = array<i32>} : memref<200x1xf32, #tpu.memory_space<vmem>>, vector<200x1xf32>,
    return
  }
  func.func @transform_0(%arg0: i32) -> i32 {
    %c0_i32 = arith.constant 0 : i32
    %c0_i32_0 = arith.constant 0 : i32
    return %c0_i32 : i32
  }
  func.func @transform_1(%arg0: i32) -> (i32, i32) {
    %c0_i32 = arith.constant 0 : i32
    %c0_i32_0 = arith.constant 0 : i32
    return %arg0, %c0_i32 : i32, i32
  }
  func.func @transform_2(%arg0: i32) -> (i32, i32) {
    %c0_i32 = arith.constant 0 : i32
    %c0_i32_0 = arith.constant 0 : i32
    %c0_i32_1 = arith.constant 0 : i32
    return %c0_i32, %c0_i32_0 : i32, i32
  }
  func.func @transform_3(%arg0: i32) -> (i32, i32) {
    %c0_i32 = arith.constant 0 : i32
    %c0_i32_0 = arith.constant 0 : i32
    %c0_i32_1 = arith.constant 0 : i32
    return %c0_i32, %c0_i32_0 : i32, i32
  }
  func.func @transform_4(%arg0: i32) -> (i32, i32) {
    %c0_i32 = arith.constant 0 : i32
    %c0_i32_0 = arith.constant 0 : i32
    %c0_i32_1 = arith.constant 0 : i32
    return %c0_i32, %c0_i32_0 : i32, i32
  }
  func.func @transform_5(%arg0: i32) -> (i32, i32) {
    %c0_i32 = arith.constant 0 : i32
    %c0_i32_0 = arith.constant 0 : i32
    %c0_i32_1 = arith.constant 0 : i32
    return %c0_i32, %c0_i32_0 : i32, i32
  }
  func.func @transform_6(%arg0: i32) -> (i32, i32) {
    %c0_i32 = arith.constant 0 : i32
    %c0_i32_0 = arith.constant 0 : i32
    %c0_i32_1 = arith.constant 0 : i32
    return %c0_i32, %c0_i32_0 : i32, i32
  }
  func.func @transform_7(%arg0: i32) -> (i32, i32) {
    %c0_i32 = arith.constant 0 : i32
    %c0_i32_0 = arith.constant 0 : i32
    %c0_i32_1 = arith.constant 0 : i32
    return %c0_i32, %c0_i32_0 : i32, i32
  }
  func.func @transform_8(%arg0: i32) -> (i32, i32) {
    %c0_i32 = arith.constant 0 : i32
    %c0_i32_0 = arith.constant 0 : i32
    %c0_i32_1 = arith.constant 0 : i32
    return %c0_i32, %c0_i32_0 : i32, i32
  }
  func.func @transform_9(%arg0: i32) -> (i32, i32) {
    %c0_i32 = arith.constant 0 : i32
    %c0_i32_0 = arith.constant 0 : i32
    %c0_i32_1 = arith.constant 0 : i32
    return %c0_i32, %c0_i32_0 : i32, i32
  }
  func.func @transform_10(%arg0: i32) -> (i32, i32) {
    %c0_i32 = arith.constant 0 : i32
    %c0_i32_0 = arith.constant 0 : i32
    %c0_i32_1 = arith.constant 0 : i32
    return %c0_i32, %c0_i32_0 : i32, i32
  }
  func.func @transform_11(%arg0: i32) -> (i32, i32) {
    %c0_i32 = arith.constant 0 : i32
    %c0_i32_0 = arith.constant 0 : i32
    %c0_i32_1 = arith.constant 0 : i32
    return %c0_i32, %c0_i32_0 : i32, i32
  }
  func.func @transform_12(%arg0: i32) -> (i32, i32) {
    %c0_i32 = arith.constant 0 : i32
    %c0_i32_0 = arith.constant 0 : i32
    %c0_i32_1 = arith.constant 0 : i32
    return %c0_i32, %c0_i32_0 : i32, i32
  }
  func.func @transform_13(%arg0: i32) -> (i32, i32) {
    %c0_i32 = arith.constant 0 : i32
    %c0_i32_0 = arith.constant 0 : i32
    return %arg0, %c0_i32 : i32, i32
  }
}

</mosaic_0001>

<bundles_post_ra>
// kernel: tpu_custom_call.1
= control target key start
LH: loop header
LB: loop body
LE: loop exit
PB: predicated region body
PF: predicated region fallthrough
CT: control target
= control target key end

     0   :  { %18 = vsyncpa [#allocation3], 0  ;;  %s3870_s25 = smov 0   ;;  %s5431_s0 = inlined_call_operand.vmem [shape: f32[2], index: 0, kind: input, shape index: {}]   ;;  %s5432_s1 = inlined_call_operand.vmem [shape: f32[400,36], index: 1, kind: input, shape index: {}]   ;;  %s5433_s2 = inlined_call_operand.vmem [shape: f32[1,36], index: 2, kind: input, shape index: {}]   ;;  %s5434_s3 = inlined_call_operand.vmem [shape: f32[36,163], index: 3, kind: input, shape index: {}]   ;;  %s5435_s4 = inlined_call_operand.vmem [shape: f32[163,10], index: 4, kind: input, shape index: {}]   ;;  %s5436_s5 = inlined_call_operand.vmem [shape: f32[36,10], index: 5, kind: input, shape index: {}]   ;;  %s5437_s6 = inlined_call_operand.vmem [shape: f32[1,36], index: 6, kind: input, shape index: {}]   ;;  %s5438_s7 = inlined_call_operand.vmem [shape: f32[163,128], index: 7, kind: input, shape index: {}]   ;;  %s5439_s8 = inlined_call_operand.vmem [shape: f32[36,128], index: 8, kind: input, shape index: {}]   ;;  %s5440_s9 = inlined_call_operand.vmem [shape: f32[1,128], index: 9, kind: input, shape index: {}]   ;;  %s5441_s10 = inlined_call_operand.vmem [shape: f32[128,64], index: 10, kind: input, shape index: {}]   ;;  %s5442_s11 = inlined_call_operand.vmem [shape: f32[1,64], index: 11, kind: input, shape index: {}]   ;;  %s5443_s12 = inlined_call_operand.vmem [shape: f32[1,64], index: 12, kind: input, shape index: {}]   ;;  %s5444_s13 = inlined_call_operand.vmem [shape: f32[400,1], index: 13, kind: output, shape index: {}]  }
   0x1 LB: > { %s2862_s26 = sadd.s32 4294967295, %s3793_s25   ;;  %p2864_p0 = scmp.ge.s32.totalorder %s3793_s25, 1  ;;  %s3793_s25 = sphi %s3870_s25, %s24_s25  }
   0x2   : > { %p333_p1 = scmp.lt.s32.totalorder %s3793_s25, 3  ;;  %s346_s29 = sshll.u32 %s5431_s0, 4  ;;  %s347_s29 = int_to_ptr.vmem [resolvable:$true] %s346_s29 }
   0x3   : > { %p3885_p3 = scmp.eq.s32.totalorder %s2862_s26, 0  ;;  %s3768_s15 = scalar_lea.vmem %s347_s29, 16 }
   0x4   : > { %p3881_p2 = pnand %p2864_p0, %p333_p1  ;;  %p3769_p6 = scmp.ne.s32.totalorder %s347_s29, %s3768_s15 }
   0x5   : > { %p3776_p10 = scmp.lt.s32.totalorder %s347_s29, %s347_s29  ;;  %p3777_p11 = scmp.lt.s32.totalorder %s3768_s15, %s3768_s15 }
   0x6   : > { %p3746_p4 = pneg %p3881_p2 }
   0x7   : > { %p3778_p12 = por %p3777_p11, %p3776_p10 }
   0x8   : > { %p3747_p5 = pnand %p3885_p3, %p3746_p4 }
   0xa   : > { %p3770_p7 = pneg %p3747_p5 }
   0xc   : > { %p3771_p8 = pnand %p3770_p7, %p3769_p6 }
   0xe   : > { %p3772_p9 = pneg %p3771_p8 }
  0x10   : > { %p3779_p13 = pnand %p3778_p12, %p3772_p9 }
  0x12   : > { %3782 = shalt.err (!%p3779_p13)
}
  0x13   : > { %s3795_s16 = smov [#allocation2]   ;;  %401 = sbr.rel (%p3881_p2) target bundleno = 942 (0x3ae), region = 72 }
  0x14   : > { %3749 = dma.vmem_to_smem (!%p3747_p5), %s347_s29, 16, %s3795_s16, [#allocation3]  }
  0x1a   : > { %3788 = dma.done.wait (%p3885_p3), [#allocation3], 16  }
  0x1b   : > { %3790 = vsyncadd (%p3885_p3), [#allocation3], 4294967280 }
  0x1c   : > { %407 = sfence }
  0x1d   : > { %v516_v0 = vld [vmem:[%s5434_s3 + $0x8] sm:$0xff]  ;;  %v518_v1 = vld [vmem:[%s5434_s3 + $0x18] sm:$0xff]  ;;  %v515_v2 = vld [vmem:[%s5434_s3] sm:$0xff]  ;;  %s446_s23 = smul.u32 25, %s2862_s26  ;;  %v3796_v7 = vmov 0.0   ;;  %v3797_v12 = vmov 0.0|0.0  }
  0x1e   : > { %v3488_v3 = vpack.c.bf16 %v518_v1, %v516_v0  ;;  %v517_v4 = vld [vmem:[%s5434_s3 + $0x10] sm:$0xff]  ;;  %v520_v5 = vld [vmem:[%s5434_s3 + $0x28] sm:$0xff]  ;;  %v522_v6 = vld [vmem:[%s5434_s3 + $0x38] sm:$0xff]  ;;  %672 = vmatprep.mubr.f32.mxu0 %v3796_v7  ;;  %3496 = vmatprep.subr.bf16.mxu1 %v3797_v12  ;;  %vm3798_vm0 = vmmov 0   ;;  %vm601_vm1 = vcmask 1043456   ;;  %vm525_vm2 = vcmask 293888  }
  0x1f   : > { %v3490_v8 = vpack.c.bf16 %v517_v4, %v515_v2  ;;  %v3492_v9 = vpack.c.bf16 %v522_v6, %v520_v5  ;;  %v519_v10 = vld [vmem:[%s5434_s3 + $0x20] sm:$0xff]  ;;  %v521_v11 = vld [vmem:[%s5434_s3 + $0x30] sm:$0xff]  ;;  %p447_p0 = scmp.lt.s32.totalorder %s446_s23, 49  ;;  %3221 = vmatprep.mubr.msk.f32.mxu1 %vm3798_vm0, %v3796_v7  ;;  %v524_v14 = vld [vmem:[%s5434_s3 + $0x48] sm:$0xf]  ;;  %vm1396_vm3 = vcmask 1042432  }
  0x20   : > { %3489 = vmatprep.subr.bf16.mxu0 %v3488_v3  ;;  %v3494_v13 = vpack.c.bf16 %v521_v11, %v519_v10  ;;  %v1047_v15 = vld [vmem:[%s5436_s5] sm:$0xff]  ;;  %v1048_v16 = vld [vmem:[%s5436_s5 + $0x8] sm:$0xff]  ;;  %v1049_v19 = vld [vmem:[%s5436_s5 + $0x10] sm:$0xff]  ;;  %vm1320_vm4 = vcmask 285696   ;;  %s3107_s14 = sld [smem:[#allocation2 + $0x1]] }
  0x21   : > { %3491 = vmatpush1.bf16.msra.mxu0 %v3490_v8  ;;  %s5448_s23 = smov (!%p447_p0, %s446_s23), 49  ;;  %v3942_v17 = vld [vmem:[%s5433_s2] ss:$0 sm:$0xff]  ;;  %v3497_v18 = vpack.c.bf16 %v1048_v16, %v1047_v15  ;;  %v1050_v20 = vld [vmem:[%s5436_s5 + $0x18] sm:$0xff]  ;;  %v1923_v22 = vld [vmem:[%s5439_s8 + $0x8] sm:$0xff] }
  0x22   : > { %3493 = vmatprep.subr.bf16.mxu0 %v3492_v9  ;;  %s2869_s27 = sshll.u32 %s5448_s23, 3  ;;  %v1922_v21 = vld [vmem:[%s5439_s8] sm:$0xff]  ;;  %v3500_v24 = vpack.c.bf16 %v1050_v20, %v1049_v19  ;;  %v1924_v29 = vld [vmem:[%s5439_s8 + $0x10] sm:$0xff]  ;;  %v1925_v30 = vld [vmem:[%s5439_s8 + $0x18] sm:$0xff] }
  0x23   : > { %s3955_s18 = scalar_lea.vmem %s5432_s1, %s2869_s27  ;;  %3498 = vmatpush3.bf16.msra.mxu1 %v3497_v18  ;;  %v523_v25 = vld [vmem:[%s5434_s3 + $0x40] sm:$0xf]  ;;  %v3533_v28 = vpack.c.bf16 %v1923_v22, %v1922_v21  ;;  %v3536_v34 = vpack.c.bf16 %v1925_v30, %v1924_v29  ;;  %v1027_v51 = vld [vmem:[%s5435_s4 + $0x8] sm:$0xff]  ;;  %v1028_v55 = vld [vmem:[%s5435_s4 + $0x10] sm:$0xff]  ;;  %s5314_s16 = scalar_lea.vmem %s5444_s13, %s2869_s27 }
  0x24   : > { %v3964_v23 = vld [vmem:[%s3955_s18] sm:$0xff]  ;;  %3499 = vmatprep.subr.bf16.mxu1 %v3797_v12  ;;  %v3974_v27 = vld [vmem:[%s3955_s18 + $0x8] sm:$0xff]  ;;  %v3992_v33 = vld [vmem:[%s3955_s18 + $0x10] sm:$0xff] }
  0x25   : > { %3495 = vmatpush1.bf16.msra.mxu0 %v3494_v13  ;;  %v490_v26 = vadd.f32 %v3942_v17, %v3964_v23  ;;  %v491_v31 = vadd.f32 %v3942_v17, %v3974_v27  ;;  %v1051_v32 = vld [vmem:[%s5436_s5 + $0x20] sm:$0xf]  ;;  %v492_v35 = vadd.f32 %v3942_v17, %v3992_v33  ;;  %v4004_v36 = vld [vmem:[%s3955_s18 + $0x18] sm:$0xff]  ;;  %v4033_v41 = vld [vmem:[%s3955_s18 + $0x28] sm:$0xff] }
  0x26   : > { %2872 = vmatprep.subr.msk.mxu0 %vm601_vm1, %v524_v14  ;;  %v1926_v37 = vld [vmem:[%s5439_s8 + $0x20] sm:$0xf]  ;;  %v493_v38 = vadd.f32 %v3942_v17, %v4004_v36  ;;  %v495_v42 = vadd.f32 %v3942_v17, %v4033_v41  ;;  %v4044_v43 = vld [vmem:[%s3955_s18 + $0x30] sm:$0xff]  ;;  %v4055_v45 = vld [vmem:[%s3955_s18 + $0x38] sm:$0xff] }
  0x27   : > { %3501 = vmatpush3.bf16.msra.mxu1 %v3500_v24  ;;  %v4020_v39 = vld [vmem:[%s3955_s18 + $0x20] sm:$0xff]  ;;  %v496_v44 = vadd.f32 %v3942_v17, %v4044_v43  ;;  %v497_v46 = vadd.f32 %v3942_v17, %v4055_v45  ;;  %v4077_v49 = vld [vmem:[%s3955_s18 + $0x48] sm:$0xff]  ;;  %v4094_v54 = vld [vmem:[%s3955_s18 + $0x50] sm:$0xff] }
  0x28   : > { %3219 = vmatprep.subr.mxu1 %v3796_v7  ;;  %v494_v40 = vadd.f32 %v3942_v17, %v4020_v39  ;;  %v4066_v47 = vld [vmem:[%s3955_s18 + $0x40] sm:$0xff]  ;;  %v499_v53 = vadd.f32 %v3942_v17, %v4077_v49  ;;  %v1029_v56 = vld [vmem:[%s5435_s4 + $0x18] sm:$0xff]  ;;  %v500_v58 = vadd.f32 %v3942_v17, %v4094_v54  ;;  %v1031_v61 = vld [vmem:[%s5435_s4 + $0x28] sm:$0xff] }
  0x29   : > { %2873 = vmatpush1.msk.msra.mxu0 %vm601_vm1, %v523_v25  ;;  %v498_v48 = vadd.f32 %v3942_v17, %v4066_v47  ;;  %v1026_v50 = vld [vmem:[%s5435_s4] sm:$0xff]  ;;  %v3506_v57 = vpack.c.bf16 %v1029_v56, %v1028_v55  ;;  %v4112_v59 = vld [vmem:[%s3955_s18 + $0x58] sm:$0xff]  ;;  %v1032_v1 = vld [vmem:[%s5435_s4 + $0x30] sm:$0xff] }
  0x2a   : > { %2874 = vmatmul.mubr.msk.f32.vlgmr.msra.gmra.mrb[0].mxu0 %vm525_vm2, %v490_v26  ;;  %3532 = vmatprep.subr.bf16.mxu0 %v3797_v12  ;;  %v3503_v52 = vpack.c.bf16 %v1027_v51, %v1026_v50  ;;  %v1030_v60 = vld [vmem:[%s5435_s4 + $0x20] sm:$0xff]  ;;  %v501_v63 = vadd.f32 %v3942_v17, %v4112_v59  ;;  %v1033_v2 = vld [vmem:[%s5435_s4 + $0x38] sm:$0xff]  ;;  %v4148_v5 = vld [vmem:[%s3955_s18 + $0x68] sm:$0xff] }
  0x2b   : > { %678 = vmatprep.mubr.f32.mxu0 %v3796_v7  ;;  %3534 = vmatpush3.bf16.msra.mxu0 %v3533_v28  ;;  %v3509_v62 = vpack.c.bf16 %v1031_v61, %v1030_v60  ;;  %v4130_v0 = vld [vmem:[%s3955_s18 + $0x60] sm:$0xff]  ;;  %v3512_v3 = vpack.c.bf16 %v1033_v2, %v1032_v1  ;;  %v1035_v8 = vld [vmem:[%s5435_s4 + $0x48] sm:$0xff]  ;;  %v503_v10 = vadd.f32 %v3942_v17, %v4148_v5  ;;  %v4166_v11 = vld [vmem:[%s3955_s18 + $0x70] sm:$0xff] }
  0x2c   : > { %3535 = vmatprep.subr.bf16.mxu0 %v3797_v12  ;;  %3220 = vmatpush3.msk.msra.mxu1 %vm601_vm1, %v1051_v32  ;;  %v502_v4 = vadd.f32 %v3942_v17, %v4130_v0  ;;  %v1034_v6 = vld [vmem:[%s5435_s4 + $0x40] sm:$0xff]  ;;  %v1036_v13 = vld [vmem:[%s5435_s4 + $0x50] sm:$0xff]  ;;  %v1037_v14 = vld [vmem:[%s5435_s4 + $0x58] sm:$0xff]  ;;  %v504_v16 = vadd.f32 %v3942_v17, %v4166_v11 }
  0x2d   : > { %3222 = vmatmul.mubr.msk.f32.vlgmr.msra.gmra.mrb[0].mxu1 %vm525_vm2, %v3964_v23  ;;  %3502 = vmatprep.subr.bf16.mxu1 %v3797_v12  ;;  %v3515_v9 = vpack.c.bf16 %v1035_v8, %v1034_v6  ;;  %v3518_v15 = vpack.c.bf16 %v1037_v14, %v1036_v13  ;;  %v4184_v18 = vld [vmem:[%s3955_s18 + $0x78] sm:$0xff]  ;;  %v1038_v19 = vld [vmem:[%s5435_s4 + $0x60] sm:$0xff]  ;;  %v1039_v20 = vld [vmem:[%s5435_s4 + $0x68] sm:$0xff] }
  0x2e   : > { %2875 = vmatmul.mubr.msk.f32.gmra.mrb[2].mxu0 %vm525_vm2, %v491_v31  ;;  %3224 = vmatprep.mubr.msk.f32.mxu1 %vm3798_vm0, %v3796_v7  ;;  %v3521_v21 = vpack.c.bf16 %v1039_v20, %v1038_v19  ;;  %v505_v22 = vadd.f32 %v3942_v17, %v4184_v18  ;;  %v4202_v24 = vld [vmem:[%s3955_s18 + $0x80] sm:$0xff]  ;;  %v1040_v25 = vld [vmem:[%s5435_s4 + $0x70] sm:$0xff]  ;;  %v1041_v26 = vld [vmem:[%s5435_s4 + $0x78] sm:$0xff] }
  0x2f   : > { %684 = vmatprep.mubr.f32.mxu0 %v3796_v7  ;;  %3537 = vmatpush3.bf16.msra.mxu0 %v3536_v34  ;;  %v3524_v28 = vpack.c.bf16 %v1041_v26, %v1040_v25  ;;  %v506_v29 = vadd.f32 %v3942_v17, %v4202_v24  ;;  %v4220_v30 = vld [vmem:[%s3955_s18 + $0x88] sm:$0xff]  ;;  %v4232_v32 = vld [vmem:[%s3955_s18 + $0x90] sm:$0xff]  ;;  %v1045_v55 = vld [vmem:[%s5435_s4 + $0x98] sm:$0xff] }
  0x30   : > { %3304 = vmatprep.subr.mxu0 %v3796_v7  ;;  %3504 = vmatpush1.bf16.msra.mxu1 %v3503_v52  ;;  %v507_v31 = vadd.f32 %v3942_v17, %v4220_v30  ;;  %v508_v34 = vadd.f32 %v3942_v17, %v4232_v32  ;;  %v4282_v50 = vld [vmem:[%s3955_s18 + $0xb0] sm:$0xff]  ;;  %v4299_v56 = vld [vmem:[%s3955_s18 + $0xb8] sm:$0xff]  ;;  %v4311_v60 = vld [vmem:[%s3955_s18 + $0xc0] sm:$0xff] }
  0x31   : > { %3225 = vmatmul.mubr.msk.f32.gmra.mrb[2].mxu1 %vm525_vm2, %v3974_v27  ;;  %3505 = vmatprep.subr.bf16.mxu1 %v3797_v12  ;;  %v512_v52 = vadd.f32 %v3942_v17, %v4282_v50  ;;  %v1046_v61 = vld [vmem:[%s5435_s4 + $0xa0] sm:$0x7]  ;;  %v1902_v1 = vld [vmem:[%s5438_s7 + $0x8] sm:$0xff]  ;;  %v1903_v2 = vld [vmem:[%s5438_s7 + $0x10] sm:$0xff] }
  0x32   : > { %2876 = vmatmul.mubr.msk.f32.gmra.mrb[4].mxu0 %vm525_vm2, %v492_v35  ;;  %3227 = vmatprep.mubr.msk.f32.mxu1 %vm3798_vm0, %v3796_v7  ;;  %v4243_v35 = vld [vmem:[%s3955_s18 + $0x98] sm:$0xff]  ;;  %v1905_v6 = vld [vmem:[%s5438_s7 + $0x20] sm:$0xff]  ;;  %v1906_v8 = vld [vmem:[%s5438_s7 + $0x28] sm:$0xff] }
  0x33   : > { %690 = vmatprep.mubr.f32.mxu0 %v3796_v7  ;;  %3305 = vmatpush3.msk.msra.mxu0 %vm601_vm1, %v1926_v37  ;;  %v509_v37 = vadd.f32 %v3942_v17, %v4243_v35  ;;  %v1908_v13 = vld [vmem:[%s5438_s7 + $0x38] sm:$0xff]  ;;  %v1911_v20 = vld [vmem:[%s5438_s7 + $0x50] sm:$0xff]  ;;  %v1913_v25 = vld [vmem:[%s5438_s7 + $0x60] sm:$0xff] }
  0x34   : > { %3538 = vmatprep.subr.bf16.mxu0 %v3797_v12  ;;  %3507 = vmatpush1.bf16.msra.mxu1 %v3506_v57  ;;  %v1914_v26 = vld [vmem:[%s5438_s7 + $0x68] sm:$0xff] }
  0x35   : > { %3228 = vmatmul.mubr.msk.f32.gmra.mrb[4].mxu1 %vm525_vm2, %v3992_v33  ;;  %3508 = vmatprep.subr.bf16.mxu1 %v3797_v12 }
  0x36   : > { %2877 = vmatmul.mubr.msk.f32.gmra.mrb[6].mxu0 %vm525_vm2, %v493_v38  ;;  %3230 = vmatprep.mubr.msk.f32.mxu1 %vm3798_vm0, %v3796_v7  ;;  %v4254_v38 = vld [vmem:[%s3955_s18 + $0xa0] sm:$0xff] }
  0x37   : > { %696 = vmatprep.mubr.f32.mxu0 %v3796_v7 }
  0x38   : > { %3510 = vmatpush1.bf16.msra.mxu1 %v3509_v62  ;;  %v514_v62 = vadd.f32 %v3942_v17, %v4311_v60 }
  0x39   : > { %3231 = vmatmul.mubr.msk.f32.gmra.mrb[6].mxu1 %vm525_vm2, %v4004_v36  ;;  %3511 = vmatprep.subr.bf16.mxu1 %v3797_v12 }
  0x3a   : > { %2878 = vmatmul.mubr.msk.f32.gmra.mrb[8].mxu0 %vm525_vm2, %v494_v40  ;;  %3233 = vmatprep.mubr.msk.f32.mxu1 %vm3798_vm0, %v3796_v7  ;;  %v510_v40 = vadd.f32 %v3942_v17, %v4254_v38 }
  0x3b   : > { %702 = vmatprep.mubr.f32.mxu0 %v3796_v7 }
  0x3c   : > { %3513 = vmatpush1.bf16.msra.mxu1 %v3512_v3  ;;  %v1904_v3 = vld [vmem:[%s5438_s7 + $0x18] sm:$0xff] }
  0x3d   : > { %3234 = vmatmul.mubr.msk.f32.gmra.mrb[8].mxu1 %vm525_vm2, %v4020_v39  ;;  %3514 = vmatprep.subr.bf16.mxu1 %v3797_v12 }
  0x3e   : > { %2879 = vmatmul.mubr.msk.f32.gmra.mrb[10].mxu0 %vm525_vm2, %v495_v42  ;;  %3236 = vmatprep.mubr.msk.f32.mxu1 %vm3798_vm0, %v3796_v7  ;;  %v4265_v42 = vld [vmem:[%s3955_s18 + $0xa8] sm:$0xff] }
  0x3f   : > { %708 = vmatprep.mubr.f32.mxu0 %v3796_v7 }
  0x40   : > { %3516 = vmatpush1.bf16.msra.mxu1 %v3515_v9  ;;  %v3545_v9 = vpack.c.bf16 %v1906_v8, %v1905_v6 }
  0x41   : > { %3237 = vmatmul.mubr.msk.f32.gmra.mrb[10].mxu1 %vm525_vm2, %v4033_v41  ;;  %3517 = vmatprep.subr.bf16.mxu1 %v3797_v12 }
  0x42   : > { %2880 = vmatmul.mubr.msk.f32.gmra.mrb[12].mxu0 %vm525_vm2, %v496_v44  ;;  %3239 = vmatprep.mubr.msk.f32.mxu1 %vm3798_vm0, %v3796_v7  ;;  %v511_v44 = vadd.f32 %v3942_v17, %v4265_v42 }
  0x43   : > { %714 = vmatprep.mubr.f32.mxu0 %v3796_v7 }
  0x44   : > { %3519 = vmatpush1.bf16.msra.mxu1 %v3518_v15  ;;  %v1909_v15 = vld [vmem:[%s5438_s7 + $0x40] sm:$0xff] }
  0x45   : > { %3240 = vmatmul.mubr.msk.f32.gmra.mrb[12].mxu1 %vm525_vm2, %v4044_v43  ;;  %3520 = vmatprep.subr.bf16.mxu1 %v3797_v12 }
  0x46   : > { %2881 = vmatmul.mubr.msk.f32.gmra.mrb[14].mxu0 %vm525_vm2, %v497_v46  ;;  %3242 = vmatprep.mubr.msk.f32.mxu1 %vm3798_vm0, %v3796_v7  ;;  %v1042_v46 = vld [vmem:[%s5435_s4 + $0x80] sm:$0xff] }
  0x47   : > { %720 = vmatprep.mubr.f32.mxu0 %v3796_v7 }
  0x48   : > { %3522 = vmatpush1.bf16.msra.mxu1 %v3521_v21  ;;  %v1912_v21 = vld [vmem:[%s5438_s7 + $0x58] sm:$0xff] }
  0x49   : > { %3243 = vmatmul.mubr.msk.f32.gmra.mrb[14].mxu1 %vm525_vm2, %v4055_v45  ;;  %3523 = vmatprep.subr.bf16.mxu1 %v3797_v12 }
  0x4a   : > { %2882 = vmatmul.mubr.msk.f32.gmra.mrb[16].mxu0 %vm525_vm2, %v498_v48  ;;  %3245 = vmatprep.mubr.msk.f32.mxu1 %vm3798_vm0, %v3796_v7  ;;  %v1043_v48 = vld [vmem:[%s5435_s4 + $0x88] sm:$0xff] }
  0x4b   : > { %726 = vmatprep.mubr.f32.mxu0 %v3796_v7  ;;  %v3527_v51 = vpack.c.bf16 %v1043_v48, %v1042_v46  ;;  %v1919_v46 = vld [vmem:[%s5438_s7 + $0x90] sm:$0xff]  ;;  %v1920_v48 = vld [vmem:[%s5438_s7 + $0x98] sm:$0xff] }
  0x4c   : > { %3525 = vmatpush1.bf16.msra.mxu1 %v3524_v28  ;;  %v3557_v28 = vpack.c.bf16 %v1914_v26, %v1913_v25  ;;  %v2374_v26 = vld [vmem:[%s5441_s10 + $0x20] sm:$0xff] }
  0x4d   : > { %3246 = vmatmul.mubr.msk.f32.gmra.mrb[16].mxu1 %vm525_vm2, %v4066_v47  ;;  %3526 = vmatprep.subr.bf16.mxu1 %v3797_v12 }
  0x4e   : > { %2883 = vmatmul.mubr.msk.f32.gmra.mrb[18].mxu0 %vm525_vm2, %v499_v53  ;;  %3248 = vmatprep.mubr.msk.f32.mxu1 %vm3798_vm0, %v3796_v7  ;;  %v1044_v53 = vld [vmem:[%s5435_s4 + $0x90] sm:$0xff] }
  0x4f   : > { %732 = vmatprep.mubr.f32.mxu0 %v3796_v7  ;;  %v3530_v57 = vpack.c.bf16 %v1045_v55, %v1044_v53  ;;  %v823_v53 = vlaneseq }
  0x50   : > { %3528 = vmatpush1.bf16.msra.mxu1 %v3527_v51  ;;  %v3566_v51 = vpack.c.bf16 %v1920_v48, %v1919_v46 }
  0x51   : > { %3249 = vmatmul.mubr.msk.f32.gmra.mrb[18].mxu1 %vm525_vm2, %v4077_v49  ;;  %3529 = vmatprep.subr.bf16.mxu1 %v3797_v12  ;;  %v4510_v55 = vand.u32 127, %v823_v53 }
  0x52   : > { %2884 = vmatmul.mubr.msk.f32.gmra.mrb[20].mxu0 %vm525_vm2, %v500_v58  ;;  %3251 = vmatprep.mubr.msk.f32.mxu1 %vm3798_vm0, %v3796_v7  ;;  %v513_v58 = vadd.f32 %v3942_v17, %v4299_v56 }
  0x53   : > { %738 = vmatprep.mubr.f32.mxu0 %v3796_v7 }
  0x54   : > { %3531 = vmatpush1.bf16.msra.mxu1 %v3530_v57 }
  0x55   : > { %3252 = vmatmul.mubr.msk.f32.gmra.mrb[20].mxu1 %vm525_vm2, %v4094_v54  ;;  %1440 = vmatprep.subr.mxu1 %v3796_v7 }
  0x56   : > { %2885 = vmatmul.mubr.msk.f32.gmra.mrb[22].mxu0 %vm525_vm2, %v501_v63  ;;  %3254 = vmatprep.mubr.msk.f32.mxu1 %vm3798_vm0, %v3796_v7  ;;  %v1901_v63 = vld [vmem:[%s5438_s7] sm:$0xff] }
  0x57   : > { %744 = vmatprep.mubr.f32.mxu0 %v3796_v7  ;;  %v3539_v17 = vpack.c.bf16 %v1902_v1, %v1901_v63  ;;  %v2371_v63 = vld [vmem:[%s5441_s10 + $0x8] sm:$0xff] }
  0x58   : > { %2975 = vmatpush1.msk.msra.mxu1 %vm1396_vm3, %v1046_v61 }
  0x59   : > { %3255 = vmatmul.mubr.msk.f32.gmra.mrb[22].mxu1 %vm525_vm2, %v4112_v59  ;;  %3568 = vmatprep.subr.bf16.mxu1 %v3797_v12 }
  0x5a   : > { %2886 = vmatmul.mubr.msk.f32.gmra.mrb[24].mxu0 %vm525_vm2, %v502_v4  ;;  %3257 = vmatprep.mubr.msk.f32.mxu1 %vm3798_vm0, %v3796_v7  ;;  %v3542_v4 = vpack.c.bf16 %v1904_v3, %v1903_v2 }
  0x5b   : > { %750 = vmatprep.mubr.f32.mxu0 %v3796_v7 }
  0x5d   : > { %3258 = vmatmul.mubr.msk.f32.gmra.mrb[24].mxu1 %vm525_vm2, %v4130_v0 }
  0x5e   : > { %2887 = vmatmul.mubr.msk.f32.gmra.mrb[26].mxu0 %vm525_vm2, %v503_v10  ;;  %3260 = vmatprep.mubr.msk.f32.mxu1 %vm3798_vm0, %v3796_v7  ;;  %v1907_v10 = vld [vmem:[%s5438_s7 + $0x30] sm:$0xff] }
  0x5f   : > { %756 = vmatprep.mubr.f32.mxu0 %v3796_v7  ;;  %v3548_v14 = vpack.c.bf16 %v1908_v13, %v1907_v10  ;;  %v2373_v10 = vld [vmem:[%s5441_s10 + $0x18] sm:$0xff] }
  0x61   : > { %3261 = vmatmul.mubr.msk.f32.gmra.mrb[26].mxu1 %vm525_vm2, %v4148_v5 }
  0x62   : > { %2888 = vmatmul.mubr.msk.f32.gmra.mrb[28].mxu0 %vm525_vm2, %v504_v16  ;;  %3263 = vmatprep.mubr.msk.f32.mxu1 %vm3798_vm0, %v3796_v7  ;;  %v1910_v16 = vld [vmem:[%s5438_s7 + $0x48] sm:$0xff] }
  0x63   : > { %762 = vmatprep.mubr.f32.mxu0 %v3796_v7  ;;  %v3551_v19 = vpack.c.bf16 %v1910_v16, %v1909_v15 }
  0x65   : > { %3264 = vmatmul.mubr.msk.f32.gmra.mrb[28].mxu1 %vm525_vm2, %v4166_v11 }
  0x66   : > { %2889 = vmatmul.mubr.msk.f32.gmra.mrb[30].mxu0 %vm525_vm2, %v505_v22  ;;  %3266 = vmatprep.mubr.msk.f32.mxu1 %vm3798_vm0, %v3796_v7  ;;  %v3554_v22 = vpack.c.bf16 %v1912_v21, %v1911_v20  ;;  %v3799_v20 = vmov 1.0  }
  0x67   : > { %768 = vmatprep.mubr.f32.mxu0 %v3796_v7 }
  0x69   : > { %3267 = vmatmul.mubr.msk.f32.gmra.mrb[30].mxu1 %vm525_vm2, %v4184_v18 }
  0x6a   : > { %2890 = vmatmul.mubr.msk.f32.gmra.mrb[32].mxu0 %vm525_vm2, %v506_v29  ;;  %3269 = vmatprep.mubr.msk.f32.mxu1 %vm3798_vm0, %v3796_v7  ;;  %v1915_v29 = vld [vmem:[%s5438_s7 + $0x70] sm:$0xff] }
  0x6b   : > { %774 = vmatprep.mubr.f32.mxu0 %v3796_v7 }
  0x6d   : > { %3270 = vmatmul.mubr.msk.f32.gmra.mrb[32].mxu1 %vm525_vm2, %v4202_v24 }
  0x6e   : > { %2891 = vmatmul.mubr.msk.f32.gmra.mrb[34].mxu0 %vm525_vm2, %v507_v31  ;;  %3272 = vmatprep.mubr.msk.f32.mxu1 %vm3798_vm0, %v3796_v7  ;;  %v1916_v31 = vld [vmem:[%s5438_s7 + $0x78] sm:$0xff] }
  0x6f   : > { %780 = vmatprep.mubr.f32.mxu0 %v3796_v7 }
  0x71   : > { %3273 = vmatmul.mubr.msk.f32.gmra.mrb[34].mxu1 %vm525_vm2, %v4220_v30 }
  0x72   : > { %2892 = vmatmul.mubr.msk.f32.gmra.mrb[36].mxu0 %vm525_vm2, %v508_v34  ;;  %3275 = vmatprep.mubr.msk.f32.mxu1 %vm3798_vm0, %v3796_v7  ;;  %v3560_v34 = vpack.c.bf16 %v1916_v31, %v1915_v29 }
  0x73   : > { %786 = vmatprep.mubr.f32.mxu0 %v3796_v7 }
  0x75   : > { %3276 = vmatmul.mubr.msk.f32.gmra.mrb[36].mxu1 %vm525_vm2, %v4232_v32 }
  0x76   : > { %2893 = vmatmul.mubr.msk.f32.gmra.mrb[38].mxu0 %vm525_vm2, %v509_v37  ;;  %3278 = vmatprep.mubr.msk.f32.mxu1 %vm3798_vm0, %v3796_v7  ;;  %v1917_v37 = vld [vmem:[%s5438_s7 + $0x80] sm:$0xff] }
  0x77   : > { %792 = vmatprep.mubr.f32.mxu0 %v3796_v7 }
  0x79   : > { %3279 = vmatmul.mubr.msk.f32.gmra.mrb[38].mxu1 %vm525_vm2, %v4243_v35 }
  0x7a   : > { %2894 = vmatmul.mubr.msk.f32.gmra.mrb[40].mxu0 %vm525_vm2, %v510_v40  ;;  %3281 = vmatprep.mubr.msk.f32.mxu1 %vm3798_vm0, %v3796_v7  ;;  %v1918_v40 = vld [vmem:[%s5438_s7 + $0x88] sm:$0xff] }
  0x7b   : > { %798 = vmatprep.mubr.f32.mxu0 %v3796_v7 }
  0x7d   : > { %3282 = vmatmul.mubr.msk.f32.gmra.mrb[40].mxu1 %vm525_vm2, %v4254_v38 }
  0x7e   : > { %2895 = vmatmul.mubr.msk.f32.gmra.mrb[42].mxu0 %vm525_vm2, %v511_v44  ;;  %3284 = vmatprep.mubr.msk.f32.mxu1 %vm3798_vm0, %v3796_v7  ;;  %v3563_v44 = vpack.c.bf16 %v1918_v40, %v1917_v37 }
  0x7f   : > { %804 = vmatprep.mubr.f32.mxu0 %v3796_v7 }
  0x81   : > { %3285 = vmatmul.mubr.msk.f32.gmra.mrb[42].mxu1 %vm525_vm2, %v4265_v42 }
  0x82   : > { %2896 = vmatmul.mubr.msk.f32.gmra.mrb[44].mxu0 %vm525_vm2, %v512_v52  ;;  %3287 = vmatprep.mubr.msk.f32.mxu1 %vm3798_vm0, %v3796_v7  ;;  %v1921_v52 = vld [vmem:[%s5438_s7 + $0xa0] sm:$0x7] }
  0x83   : > { %810 = vmatprep.mubr.f32.mxu0 %v3796_v7 }
  0x85   : > { %3288 = vmatmul.mubr.msk.f32.gmra.mrb[44].mxu1 %vm525_vm2, %v4282_v50 }
  0x86   : > { %2897 = vmatmul.mubr.msk.f32.gmra.mrb[46].mxu0 %vm525_vm2, %v513_v58  ;;  %3290 = vmatprep.mubr.msk.f32.mxu1 %vm3798_vm0, %v3796_v7 }
  0x87   : > { %816 = vmatprep.mubr.f32.mxu0 %v3796_v7 }
  0x89   : > { %3291 = vmatmul.mubr.msk.f32.gmra.mrb[46].mxu1 %vm525_vm2, %v4299_v56 }
  0x8a   : > { %2898 = vmatmul.mubr.msk.f32.gmra.mrb[48].mxu0 %vm525_vm2, %v514_v62  ;;  %3293 = vmatprep.mubr.msk.f32.mxu1 %vm3798_vm0, %v3796_v7 }
  0x8b   : > { %3306 = vmatprep.mubr.msk.f32.mxu0 %vm3798_vm0, %v3796_v7 }
  0x8d   : > { %3294 = vmatmul.mubr.msk.f32.gmra.mrb[48].mxu1 %vm525_vm2, %v4311_v60 }
  0x8e   : > { %3307 = vmatmul.mubr.msk.f32.vlgmr.msra.gmra.mrb[50].mxu0 %vm525_vm2, %v3964_v23 }
  0x8f   : > { %3540 = vmatpush1.bf16.msra.mxu0 %v3539_v17  ;;  %3309 = vmatprep.mubr.msk.f32.mxu0 %vm3798_vm0, %v3796_v7 }
  0x90   : > { %3541 = vmatprep.subr.bf16.mxu0 %v3797_v12 }
  0x92   : > { %3310 = vmatmul.mubr.msk.f32.gmra.mrb[52].mxu0 %vm525_vm2, %v3974_v27 }
  0x93   : > { %3312 = vmatprep.mubr.msk.f32.mxu0 %vm3798_vm0, %v3796_v7  ;;  %3543 = vmatpush1.bf16.msra.mxu0 %v3542_v4 }
  0x94   : > { %3544 = vmatprep.subr.bf16.mxu0 %v3797_v12 }
  0x96   : > { %3313 = vmatmul.mubr.msk.f32.gmra.mrb[54].mxu0 %vm525_vm2, %v3992_v33 }
  0x97   : > { %3315 = vmatprep.mubr.msk.f32.mxu0 %vm3798_vm0, %v3796_v7  ;;  %3546 = vmatpush1.bf16.msra.mxu0 %v3545_v9  ;;  %v2372_v9 = vld [vmem:[%s5441_s10 + $0x10] sm:$0xff] }
  0x98   : > { %3547 = vmatprep.subr.bf16.mxu0 %v3797_v12 }
  0x9a   : > { %3316 = vmatmul.mubr.msk.f32.gmra.mrb[56].mxu0 %vm525_vm2, %v4004_v36 }
  0x9b   : > { %3318 = vmatprep.mubr.msk.f32.mxu0 %vm3798_vm0, %v3796_v7  ;;  %3549 = vmatpush1.bf16.msra.mxu0 %v3548_v14 }
  0x9c   : > { %3550 = vmatprep.subr.bf16.mxu0 %v3797_v12 }
  0x9e   : > { %3319 = vmatmul.mubr.msk.f32.gmra.mrb[58].mxu0 %vm525_vm2, %v4020_v39 }
  0x9f   : > { %3321 = vmatprep.mubr.msk.f32.mxu0 %vm3798_vm0, %v3796_v7  ;;  %3552 = vmatpush1.bf16.msra.mxu0 %v3551_v19 }
  0xa0   : > { %3553 = vmatprep.subr.bf16.mxu0 %v3797_v12 }
  0xa2   : > { %3322 = vmatmul.mubr.msk.f32.gmra.mrb[60].mxu0 %vm525_vm2, %v4033_v41 }
  0xa3   : > { %3324 = vmatprep.mubr.msk.f32.mxu0 %vm3798_vm0, %v3796_v7  ;;  %3555 = vmatpush1.bf16.msra.mxu0 %v3554_v22  ;;  %v3572_v22 = vpack.c.bf16 %v2373_v10, %v2372_v9 }
  0xa4   : > { %3556 = vmatprep.subr.bf16.mxu0 %v3797_v12 }
  0xa6   : > { %3325 = vmatmul.mubr.msk.f32.gmra.mrb[62].mxu0 %vm525_vm2, %v4044_v43 }
  0xa7   : > { %3327 = vmatprep.mubr.msk.f32.mxu0 %vm3798_vm0, %v3796_v7  ;;  %3558 = vmatpush1.bf16.msra.mxu0 %v3557_v28  ;;  %v2375_v28 = vld [vmem:[%s5441_s10 + $0x28] sm:$0xff] }
  0xa8   : > { %3559 = vmatprep.subr.bf16.mxu0 %v3797_v12  ;;  %v3575_v46 = vpack.c.bf16 %v2375_v28, %v2374_v26 }
  0xaa   : > { %3328 = vmatmul.mubr.msk.f32.gmra.mrb[64].mxu0 %vm525_vm2, %v4055_v45 }
  0xab   : > { %3330 = vmatprep.mubr.msk.f32.mxu0 %vm3798_vm0, %v3796_v7  ;;  %3561 = vmatpush1.bf16.msra.mxu0 %v3560_v34 }
  0xac   : > { %3562 = vmatprep.subr.bf16.mxu0 %v3797_v12 }
  0xae   : > { %3331 = vmatmul.mubr.msk.f32.gmra.mrb[66].mxu0 %vm525_vm2, %v4066_v47 }
  0xaf   : > { %3333 = vmatprep.mubr.msk.f32.mxu0 %vm3798_vm0, %v3796_v7  ;;  %3564 = vmatpush1.bf16.msra.mxu0 %v3563_v44 }
  0xb0   : > { %3565 = vmatprep.subr.bf16.mxu0 %v3797_v12 }
  0xb2   : > { %3334 = vmatmul.mubr.msk.f32.gmra.mrb[68].mxu0 %vm525_vm2, %v4077_v49 }
  0xb3   : > { %3336 = vmatprep.mubr.msk.f32.mxu0 %vm3798_vm0, %v3796_v7  ;;  %3567 = vmatpush1.bf16.msra.mxu0 %v3566_v51 }
  0xb4   : > { %2163 = vmatprep.subr.mxu0 %v3796_v7 }
  0xb6   : > { %3337 = vmatmul.mubr.msk.f32.gmra.mrb[70].mxu0 %vm525_vm2, %v4094_v54 }
  0xb7   : > { %3339 = vmatprep.mubr.msk.f32.mxu0 %vm3798_vm0, %v3796_v7  ;;  %3053 = vmatpush1.msk.msra.mxu0 %vm1396_vm3, %v1921_v52 }
  0xba   : > { %3340 = vmatmul.mubr.msk.f32.gmra.mrb[72].mxu0 %vm525_vm2, %v4112_v59 }
  0xbb   : > { %3342 = vmatprep.mubr.msk.f32.mxu0 %vm3798_vm0, %v3796_v7 }
  0xbe   : > { %3343 = vmatmul.mubr.msk.f32.gmra.mrb[74].mxu0 %vm525_vm2, %v4130_v0 }
  0xbf   : > { %3345 = vmatprep.mubr.msk.f32.mxu0 %vm3798_vm0, %v3796_v7 }
  0xc2   : > { %3346 = vmatmul.mubr.msk.f32.gmra.mrb[76].mxu0 %vm525_vm2, %v4148_v5 }
  0xc3   : > { %3348 = vmatprep.mubr.msk.f32.mxu0 %vm3798_vm0, %v3796_v7 }
  0xc6   : > { %3349 = vmatmul.mubr.msk.f32.gmra.mrb[78].mxu0 %vm525_vm2, %v4166_v11 }
  0xc7   : > { %3351 = vmatprep.mubr.msk.f32.mxu0 %vm3798_vm0, %v3796_v7 }
  0xca   : > { %3352 = vmatmul.mubr.msk.f32.gmra.mrb[80].mxu0 %vm525_vm2, %v4184_v18 }
  0xcb   : > { %3354 = vmatprep.mubr.msk.f32.mxu0 %vm3798_vm0, %v3796_v7 }
  0xce   : > { %3355 = vmatmul.mubr.msk.f32.gmra.mrb[82].mxu0 %vm525_vm2, %v4202_v24 }
  0xcf   : > { %3357 = vmatprep.mubr.msk.f32.mxu0 %vm3798_vm0, %v3796_v7 }
  0xd2   : > { %3358 = vmatmul.mubr.msk.f32.gmra.mrb[84].mxu0 %vm525_vm2, %v4220_v30 }
  0xd3   : > { %3360 = vmatprep.mubr.msk.f32.mxu0 %vm3798_vm0, %v3796_v7 }
  0xd6   : > { %3361 = vmatmul.mubr.msk.f32.gmra.mrb[86].mxu0 %vm525_vm2, %v4232_v32 }
  0xd7   : > { %3363 = vmatprep.mubr.msk.f32.mxu0 %vm3798_vm0, %v3796_v7 }
  0xda   : > { %3364 = vmatmul.mubr.msk.f32.gmra.mrb[88].mxu0 %vm525_vm2, %v4243_v35 }
  0xdb   : > { %3366 = vmatprep.mubr.msk.f32.mxu0 %vm3798_vm0, %v3796_v7 }
  0xde   : > { %3367 = vmatmul.mubr.msk.f32.gmra.mrb[90].mxu0 %vm525_vm2, %v4254_v38 }
  0xdf   : > { %3369 = vmatprep.mubr.msk.f32.mxu0 %vm3798_vm0, %v3796_v7 }
  0xe2   : > { %3370 = vmatmul.mubr.msk.f32.gmra.mrb[92].mxu0 %vm525_vm2, %v4265_v42 }
  0xe3   : > { %3372 = vmatprep.mubr.msk.f32.mxu0 %vm3798_vm0, %v3796_v7 }
  0xe6   : > { %3373 = vmatmul.mubr.msk.f32.gmra.mrb[94].mxu0 %vm525_vm2, %v4282_v50  ;;  %v4513_v50 = vadd.s32 128, %v4510_v55 }
  0xe7   : > { %3375 = vmatprep.mubr.msk.f32.mxu0 %vm3798_vm0, %v3796_v7 }
  0xea   : > { %3376 = vmatmul.mubr.msk.f32.gmra.mrb[96].mxu0 %vm525_vm2, %v4299_v56  ;;  %v2370_v56 = vld [vmem:[%s5441_s10] sm:$0xff] }
  0xeb   : > { %3378 = vmatprep.mubr.msk.f32.mxu0 %vm3798_vm0, %v3796_v7  ;;  %v3569_v6 = vpack.c.bf16 %v2371_v63, %v2370_v56 }
  0xee   : > { %3379 = vmatmul.mubr.msk.f32.gmra.mrb[98].mxu0 %vm525_vm2, %v4311_v60 }
  0xfd   : > { %v674_v57 = vpop.f32.mrb[0].mxu0 }
  0xfe   : > { %v3642_v58 = vtrunc.f32 %v674_v57  ;;  %v676_v61 = vpop.f32.mrb[1].mxu0 }
  0xff   : > { %v3644_v62 = vtrunc.f32 %v676_v61  ;;  %v2376_v61 = vld [vmem:[%s5441_s10 + $0x30] sm:$0xff] }
 0x100   : > { %v3643_v1 = vcvt.f32.s32 %v3642_v58 }
 0x101   : > { %v3645_v60 = vcvt.f32.s32 %v3644_v62  ;;  %v680_v17 = vpop.f32.mrb[2].mxu0  ;;  %v2377_v62 = vld [vmem:[%s5441_s10 + $0x38] sm:$0xff] }
 0x102   : > { %v3646_v2 = vtrunc.f32 %v680_v17  ;;  %v682_v3 = vpop.f32.mrb[3].mxu0  ;;  %vm876_vm6 = vcmp.eq.s32.totalorder %v3643_v1, %v4510_v55  ;;  %v3578_v63 = vpack.c.bf16 %v2377_v62, %v2376_v61 }
 0x103   : > { %vm877_vm5 = vcmp.eq.s32.totalorder %v3645_v60, %v4513_v50  ;;  %v3648_v4 = vtrunc.f32 %v682_v3 }
 0x104   : > { %v2900_v8 = vsel %vm877_vm5, 1.0, %v3796_v7  ;;  %v3647_v13 = vcvt.f32.s32 %v3646_v2 }
 0x105   : > { %v3649_v14 = vcvt.f32.s32 %v3648_v4  ;;  %v686_v15 = vpop.f32.mrb[4].mxu0  ;;  %2976 = vmatprep.mubr.msk.f32.mxu1 %vm1320_vm4, %v2900_v8  ;;  %3054 = vmatprep.mubr.msk.f32.mxu0 %vm1320_vm4, %v2900_v8 }
 0x106   : > { %v3650_v16 = vtrunc.f32 %v686_v15  ;;  %v688_v19 = vpop.f32.mrb[5].mxu0  ;;  %2977 = vmatmul.mubr.msk.f32.vlgmr.msra.gmra.mrb[0].mxu1 %vm876_vm6, %v3799_v20  ;;  %3055 = vmatmul.mubr.msk.f32.vlgmr.msra.gmra.mrb[100].mxu0 %vm876_vm6, %v3799_v20  ;;  %vm878_vm8 = vcmp.eq.s32.totalorder %v3647_v13, %v4510_v55 }
 0x107   : > { %vm879_vm7 = vcmp.eq.s32.totalorder %v3649_v14, %v4513_v50  ;;  %v3652_v21 = vtrunc.f32 %v688_v19  ;;  %3570 = vmatpush3.bf16.msra.mxu1 %v3569_v6 }
 0x108   : > { %v2902_v25 = vsel %vm879_vm7, 1.0, %v3796_v7  ;;  %3571 = vmatprep.subr.bf16.mxu1 %v3797_v12  ;;  %v3651_v29 = vcvt.f32.s32 %v3650_v16 }
 0x109   : > { %v3653_v31 = vcvt.f32.s32 %v3652_v21  ;;  %v692_v34 = vpop.f32.mrb[6].mxu0  ;;  %2978 = vmatprep.mubr.msk.f32.mxu1 %vm1320_vm4, %v2902_v25  ;;  %3056 = vmatprep.mubr.msk.f32.mxu0 %vm1320_vm4, %v2902_v25 }
 0x10a   : > { %v3654_v37 = vtrunc.f32 %v692_v34  ;;  %v694_v40 = vpop.f32.mrb[7].mxu0  ;;  %2979 = vmatmul.mubr.msk.f32.gmra.mrb[2].mxu1 %vm878_vm8, %v3799_v20  ;;  %3057 = vmatmul.mubr.msk.f32.gmra.mrb[102].mxu0 %vm878_vm8, %v3799_v20  ;;  %vm880_vm10 = vcmp.eq.s32.totalorder %v3651_v29, %v4510_v55  ;;  %v1643_v29 = vmul.f32 %v3992_v33, %v3992_v33  ;;  %v1641_v34 = vmul.f32 %v3964_v23, %v3964_v23 }
 0x10b   : > { %vm881_vm9 = vcmp.eq.s32.totalorder %v3653_v31, %v4513_v50  ;;  %v3656_v44 = vtrunc.f32 %v694_v40  ;;  %3573 = vmatpush3.bf16.msra.mxu1 %v3572_v22  ;;  %v4590_v31 = vld [vmem:[%s5437_s6] ss:$0 sm:$0xff]  ;;  %v2379_v40 = vld [vmem:[%s5441_s10 + $0x48] sm:$0xff] }
 0x10c   : > { %v2904_v48 = vsel %vm881_vm9, 1.0, %v3796_v7  ;;  %3574 = vmatprep.subr.bf16.mxu1 %v3797_v12  ;;  %v3655_v51 = vcvt.f32.s32 %v3654_v37  ;;  %v2378_v37 = vld [vmem:[%s5441_s10 + $0x40] sm:$0xff] }
 0x10d   : > { %v3657_v52 = vcvt.f32.s32 %v3656_v44  ;;  %v698_v53 = vpop.f32.mrb[8].mxu0  ;;  %2980 = vmatprep.mubr.msk.f32.mxu1 %vm1320_vm4, %v2904_v48  ;;  %3058 = vmatprep.mubr.msk.f32.mxu0 %vm1320_vm4, %v2904_v48  ;;  %v3581_v33 = vpack.c.bf16 %v2379_v40, %v2378_v37  ;;  %v1648_v40 = vmul.f32 %v4055_v45, %v4055_v45 }
 0x10e   : > { %v3658_v57 = vtrunc.f32 %v698_v53  ;;  %v700_v58 = vpop.f32.mrb[9].mxu0  ;;  %2981 = vmatmul.mubr.msk.f32.gmra.mrb[4].mxu1 %vm880_vm10, %v3799_v20  ;;  %3059 = vmatmul.mubr.msk.f32.gmra.mrb[104].mxu0 %vm880_vm10, %v3799_v20  ;;  %vm882_vm12 = vcmp.eq.s32.totalorder %v3655_v51, %v4510_v55  ;;  %v1675_v51 = vmul.f32 %v4590_v31, %v1643_v29  ;;  %v2380_v29 = vld [vmem:[%s5441_s10 + $0x50] sm:$0xff] }
 0x10f   : > { %vm883_vm11 = vcmp.eq.s32.totalorder %v3657_v52, %v4513_v50  ;;  %v3660_v56 = vtrunc.f32 %v700_v58  ;;  %3576 = vmatpush3.bf16.msra.mxu1 %v3575_v46  ;;  %v1673_v52 = vmul.f32 %v4590_v31, %v1641_v34  ;;  %v2381_v34 = vld [vmem:[%s5441_s10 + $0x58] sm:$0xff] }
 0x110   : > { %v2906_v1 = vsel %vm883_vm11, 1.0, %v3796_v7  ;;  %3577 = vmatprep.subr.bf16.mxu1 %v3797_v12  ;;  %v3659_v60 = vcvt.f32.s32 %v3658_v57  ;;  %v1704_v61 = vsel %vm525_vm2, %v1675_v51, 0.0 }
 0x111   : > { %v3661_v17 = vcvt.f32.s32 %v3660_v56  ;;  %v704_v2 = vpop.f32.mrb[10].mxu0  ;;  %2982 = vmatprep.mubr.msk.f32.mxu1 %vm1320_vm4, %v2906_v1  ;;  %3060 = vmatprep.mubr.msk.f32.mxu0 %vm1320_vm4, %v2906_v1  ;;  %v1698_v62 = vsel %vm525_vm2, %v1673_v52, 0.0  ;;  %v1642_v1 = vmul.f32 %v3974_v27, %v3974_v27  ;;  %v1646_v27 = vmul.f32 %v4033_v41, %v4033_v41 }
 0x112   : > { %v3662_v3 = vtrunc.f32 %v704_v2  ;;  %v706_v4 = vpop.f32.mrb[11].mxu0  ;;  %2983 = vmatmul.mubr.msk.f32.gmra.mrb[6].mxu1 %vm882_vm12, %v3799_v20  ;;  %3061 = vmatmul.mubr.msk.f32.gmra.mrb[106].mxu0 %vm882_vm12, %v3799_v20  ;;  %vm884_vm14 = vcmp.eq.s32.totalorder %v3659_v60, %v4510_v55 }
 0x113   : > { %vm885_vm13 = vcmp.eq.s32.totalorder %v3661_v17, %v4513_v50  ;;  %v3664_v6 = vtrunc.f32 %v706_v4  ;;  %3579 = vmatpush3.bf16.msra.mxu1 %v3578_v63  ;;  %1705 = vadd.xlane.f32.xlu1 %v1704_v61  ;;  %v1644_v63 = vmul.f32 %v4004_v36, %v4004_v36 }
 0x114   : > { %v2908_v8 = vsel %vm885_vm13, 1.0, %v3796_v7  ;;  %3580 = vmatprep.subr.bf16.mxu1 %v3797_v12  ;;  %v3663_v9 = vcvt.f32.s32 %v3662_v3  ;;  %1699 = vadd.xlane.f32.xlu0 %v1698_v62 }
 0x115   : > { %v3665_v10 = vcvt.f32.s32 %v3664_v6  ;;  %v710_v13 = vpop.f32.mrb[12].mxu0  ;;  %2984 = vmatprep.mubr.msk.f32.mxu1 %vm1320_vm4, %v2908_v8  ;;  %3062 = vmatprep.mubr.msk.f32.mxu0 %vm1320_vm4, %v2908_v8  ;;  %v1676_v4 = vmul.f32 %v4590_v31, %v1644_v63  ;;  %v1674_v6 = vmul.f32 %v4590_v31, %v1642_v1 }
 0x116   : > { %v3666_v14 = vtrunc.f32 %v710_v13  ;;  %v712_v15 = vpop.f32.mrb[13].mxu0  ;;  %2985 = vmatmul.mubr.msk.f32.gmra.mrb[8].mxu1 %vm884_vm14, %v3799_v20  ;;  %3063 = vmatmul.mubr.msk.f32.gmra.mrb[108].mxu0 %vm884_vm14, %v3799_v20  ;;  %vm886_vm1 = vcmp.eq.s32.totalorder %v3663_v9, %v4510_v55  ;;  %v1645_v9 = vmul.f32 %v4020_v39, %v4020_v39 }
 0x117   : > { %vm887_vm15 = vcmp.eq.s32.totalorder %v3665_v10, %v4513_v50  ;;  %v3668_v16 = vtrunc.f32 %v712_v15  ;;  %3582 = vmatpush3.bf16.msra.mxu1 %v3581_v33  ;;  %v1707_v13 = vsel %vm525_vm2, %v1676_v4, 0.0 }
 0x118   : > { %v2910_v19 = vsel %vm887_vm15, 1.0, %v3796_v7  ;;  %v3667_v21 = vcvt.f32.s32 %v3666_v14  ;;  %v1701_v14 = vsel %vm525_vm2, %v1674_v6, 0.0  ;;  %3583 = vmatprep.subr.bf16.mxu1 %v3797_v12  ;;  %1708 = vadd.xlane.f32.xlu1 %v1707_v13  ;;  %v1677_v41 = vmul.f32 %v4590_v31, %v1645_v9 }
 0x119   : > { %v3669_v22 = vcvt.f32.s32 %v3668_v16  ;;  %v716_v25 = vpop.f32.mrb[14].mxu0  ;;  %2986 = vmatprep.mubr.msk.f32.mxu1 %vm1320_vm4, %v2910_v19  ;;  %3064 = vmatprep.mubr.msk.f32.mxu0 %vm1320_vm4, %v2910_v19  ;;  %v1678_v19 = vmul.f32 %v4590_v31, %v1646_v27  ;;  %v1651_v27 = vmul.f32 %v4094_v54, %v4094_v54 }
 0x11a   : > { %v3670_v26 = vtrunc.f32 %v716_v25  ;;  %v718_v28 = vpop.f32.mrb[15].mxu0  ;;  %2987 = vmatmul.mubr.msk.f32.gmra.mrb[10].mxu1 %vm886_vm1, %v3799_v20  ;;  %3065 = vmatmul.mubr.msk.f32.gmra.mrb[110].mxu0 %vm886_vm1, %v3799_v20  ;;  %vm888_vm5 = vcmp.eq.s32.totalorder %v3667_v21, %v4510_v55 }
 0x11b   : > { %vm889_vm3 = vcmp.eq.s32.totalorder %v3669_v22, %v4513_v50  ;;  %v3672_v44 = vtrunc.f32 %v718_v28  ;;  %1702 = vadd.xlane.f32.xlu0 %v1701_v14  ;;  %v1710_v28 = vsel %vm525_vm2, %v1677_v41, 0.0  ;;  %v1653_v41 = vmul.f32 %v4130_v0, %v4130_v0 }
 0x11c   : > { %v3671_v46 = vcvt.f32.s32 %v3670_v26  ;;  %v2912_v48 = vsel %vm889_vm3, 1.0, %v3796_v7  ;;  %v1713_v26 = vsel %vm525_vm2, %v1678_v19, 0.0  ;;  %v1654_v19 = vmul.f32 %v4148_v5, %v4148_v5 }
 0x11d   : > { %v3673_v23 = vcvt.f32.s32 %v3672_v44  ;;  %v722_v53 = vpop.f32.mrb[16].mxu0  ;;  %2988 = vmatprep.mubr.msk.f32.mxu1 %vm1320_vm4, %v2912_v48  ;;  %3066 = vmatprep.mubr.msk.f32.mxu0 %vm1320_vm4, %v2912_v48  ;;  %v1647_v44 = vmul.f32 %v4044_v43, %v4044_v43 }
 0x11e   : > { %v3674_v57 = vtrunc.f32 %v722_v53  ;;  %v724_v58 = vpop.f32.mrb[17].mxu0  ;;  %2989 = vmatmul.mubr.msk.f32.gmra.mrb[12].mxu1 %vm888_vm5, %v3799_v20  ;;  %3067 = vmatmul.mubr.msk.f32.gmra.mrb[112].mxu0 %vm888_vm5, %v3799_v20  ;;  %vm890_vm7 = vcmp.eq.s32.totalorder %v3671_v46, %v4510_v55  ;;  %v3584_v46 = vpack.c.bf16 %v2381_v34, %v2380_v29  ;;  %v1686_v0 = vmul.f32 %v4590_v31, %v1654_v19 }
 0x11f   : > { %vm891_vm6 = vcmp.eq.s32.totalorder %v3673_v23, %v4513_v50  ;;  %v3676_v56 = vtrunc.f32 %v724_v58  ;;  %1714 = vadd.xlane.f32.xlu1 %v1713_v26  ;;  %1711 = vadd.xlane.f32.xlu0 %v1710_v28  ;;  %v1680_v23 = vmul.f32 %v4590_v31, %v1648_v40  ;;  %v1679_v45 = vmul.f32 %v4590_v31, %v1647_v44 }
 0x120   : > { %v2914_v60 = vsel %vm891_vm6, 1.0, %v3796_v7  ;;  %v3675_v17 = vcvt.f32.s32 %v3674_v57  ;;  %v1650_v57 = vmul.f32 %v4077_v49, %v4077_v49  ;;  %v1649_v58 = vmul.f32 %v4066_v47, %v4066_v47  ;;  %3585 = vmatpush3.bf16.msra.mxu1 %v3584_v46 }
 0x121   : > { %v3677_v2 = vcvt.f32.s32 %v3676_v56  ;;  %v728_v3 = vpop.f32.mrb[18].mxu0  ;;  %2990 = vmatprep.mubr.msk.f32.mxu1 %vm1320_vm4, %v2914_v60  ;;  %3068 = vmatprep.mubr.msk.f32.mxu0 %vm1320_vm4, %v2914_v60  ;;  %v1719_v62 = vsel %vm525_vm2, %v1680_v23, 0.0  ;;  %v1716_v56 = vsel %vm525_vm2, %v1679_v45, 0.0  ;;  %v1685_v29 = vmul.f32 %v4590_v31, %v1653_v41 }
 0x122   : > { %v3678_v36 = vtrunc.f32 %v728_v3  ;;  %v730_v8 = vpop.f32.mrb[19].mxu0  ;;  %2991 = vmatmul.mubr.msk.f32.gmra.mrb[14].mxu1 %vm890_vm7, %v3799_v20  ;;  %3069 = vmatmul.mubr.msk.f32.gmra.mrb[114].mxu0 %vm890_vm7, %v3799_v20  ;;  %vm892_vm9 = vcmp.eq.s32.totalorder %v3675_v17, %v4510_v55  ;;  %v1682_v60 = vmul.f32 %v4590_v31, %v1650_v57  ;;  %v1681_v49 = vmul.f32 %v4590_v31, %v1649_v58 }
 0x123   : > { %vm893_vm8 = vcmp.eq.s32.totalorder %v3677_v2, %v4513_v50  ;;  %v3680_v10 = vtrunc.f32 %v730_v8  ;;  %1720 = vadd.xlane.f32.xlu1 %v1719_v62  ;;  %1717 = vadd.xlane.f32.xlu0 %v1716_v56  ;;  %v1652_v8 = vmul.f32 %v4112_v59, %v4112_v59  ;;  %v1737_v46 = vsel %vm525_vm2, %v1686_v0, 0.0 }
 0x124   : > { %v3679_v15 = vcvt.f32.s32 %v3678_v36  ;;  %v2916_v16 = vsel %vm893_vm8, 1.0, %v3796_v7  ;;  %v1725_v4 = vsel %vm525_vm2, %v1682_v60, 0.0  ;;  %v1722_v6 = vsel %vm525_vm2, %v1681_v49, 0.0  ;;  %3586 = vmatprep.subr.bf16.mxu1 %v3797_v12 }
 0x125   : > { %v3681_v39 = vcvt.f32.s32 %v3680_v10  ;;  %v734_v21 = vpop.f32.mrb[20].mxu0  ;;  %2992 = vmatprep.mubr.msk.f32.mxu1 %vm1320_vm4, %v2916_v16  ;;  %3070 = vmatprep.mubr.msk.f32.mxu0 %vm1320_vm4, %v2916_v16  ;;  %v1684_v59 = vmul.f32 %v4590_v31, %v1652_v8  ;;  %v1655_v23 = vmul.f32 %v4166_v11, %v4166_v11  ;;  %v1658_v11 = vmul.f32 %v4220_v30, %v4220_v30 }
 0x126   : > { %v3682_v22 = vtrunc.f32 %v734_v21  ;;  %v736_v25 = vpop.f32.mrb[21].mxu0  ;;  %2993 = vmatmul.mubr.msk.f32.gmra.mrb[16].mxu1 %vm892_vm9, %v3799_v20  ;;  %3071 = vmatmul.mubr.msk.f32.gmra.mrb[116].mxu0 %vm892_vm9, %v3799_v20  ;;  %vm894_vm11 = vcmp.eq.s32.totalorder %v3679_v15, %v4510_v55  ;;  %v1683_v15 = vmul.f32 %v4590_v31, %v1651_v27  ;;  %v2383_v21 = vld [vmem:[%s5441_s10 + $0x68] sm:$0xff]  ;;  %v1657_v56 = vmul.f32 %v4202_v24, %v4202_v24 }
 0x127   : > { %vm895_vm10 = vcmp.eq.s32.totalorder %v3681_v39, %v4513_v50  ;;  %v3684_v37 = vtrunc.f32 %v736_v25  ;;  %1726 = vadd.xlane.f32.xlu1 %v1725_v4  ;;  %1723 = vadd.xlane.f32.xlu0 %v1722_v6  ;;  %v2382_v39 = vld [vmem:[%s5441_s10 + $0x60] sm:$0xff]  ;;  %v1731_v25 = vsel %vm525_vm2, %v1684_v59, 0.0  ;;  %v1660_v8 = vmul.f32 %v4243_v35, %v4243_v35 }
 0x128   : > { %v2918_v33 = vsel %vm895_vm10, 1.0, %v3796_v7  ;;  %v3683_v48 = vcvt.f32.s32 %v3682_v22  ;;  %v1728_v26 = vsel %vm525_vm2, %v1683_v15, 0.0  ;;  %v3587_v40 = vpack.c.bf16 %v2383_v21, %v2382_v39  ;;  %v2385_v15 = vld [vmem:[%s5441_s10 + $0x78] sm:$0xff] }
 0x129   : > { %v3685_v51 = vcvt.f32.s32 %v3684_v37  ;;  %v740_v52 = vpop.f32.mrb[22].mxu0  ;;  %2994 = vmatprep.mubr.msk.f32.mxu1 %vm1320_vm4, %v2918_v33  ;;  %3072 = vmatprep.mubr.msk.f32.mxu0 %vm1320_vm4, %v2918_v33  ;;  %v1689_v30 = vmul.f32 %v4590_v31, %v1657_v56  ;;  %v1659_v27 = vmul.f32 %v4232_v32, %v4232_v32  ;;  %v1692_v59 = vmul.f32 %v4590_v31, %v1660_v8  ;;  %v2384_v32 = vld [vmem:[%s5441_s10 + $0x70] sm:$0xff] }
 0x12a   : > { %v3686_v53 = vtrunc.f32 %v740_v52  ;;  %v742_v43 = vpop.f32.mrb[23].mxu0  ;;  %2995 = vmatmul.mubr.msk.f32.gmra.mrb[18].mxu1 %vm894_vm11, %v3799_v20  ;;  %3073 = vmatmul.mubr.msk.f32.gmra.mrb[118].mxu0 %vm894_vm11, %v3799_v20  ;;  %vm896_vm13 = vcmp.eq.s32.totalorder %v3683_v48, %v4510_v55  ;;  %v1734_v48 = vsel %vm525_vm2, %v1685_v29, 0.0  ;;  %v1656_v52 = vmul.f32 %v4184_v18, %v4184_v18 }
 0x12b   : > { %vm897_vm12 = vcmp.eq.s32.totalorder %v3685_v51, %v4513_v50  ;;  %v3688_v61 = vtrunc.f32 %v742_v43  ;;  %1732 = vadd.xlane.f32.xlu1 %v1731_v25  ;;  %1729 = vadd.xlane.f32.xlu0 %v1728_v26  ;;  %v1687_v18 = vmul.f32 %v4590_v31, %v1655_v23  ;;  %v1746_v6 = vsel %vm525_vm2, %v1689_v30, 0.0 }
 0x12c   : > { %v3687_v63 = vcvt.f32.s32 %v3686_v53  ;;  %v2920_v1 = vsel %vm897_vm12, 1.0, %v3796_v7  ;;  %3588 = vmatpush3.bf16.msra.mxu1 %v3587_v40  ;;  %v1688_v58 = vmul.f32 %v4590_v31, %v1656_v52  ;;  %v1691_v35 = vmul.f32 %v4590_v31, %v1659_v27 }
 0x12d   : > { %v3689_v47 = vcvt.f32.s32 %v3688_v61  ;;  %v746_v17 = vpop.f32.mrb[24].mxu0  ;;  %2996 = vmatprep.mubr.msk.f32.mxu1 %vm1320_vm4, %v2920_v1  ;;  %3074 = vmatprep.mubr.msk.f32.mxu0 %vm1320_vm4, %v2920_v1  ;;  %v1740_v60 = vsel %vm525_vm2, %v1687_v18, 0.0  ;;  %v3590_v19 = vpack.c.bf16 %v2385_v15, %v2384_v32  ;;  %v1662_v41 = vmul.f32 %v4265_v42, %v4265_v42 }
 0x12e   : > { %v3690_v2 = vtrunc.f32 %v746_v17  ;;  %v748_v3 = vpop.f32.mrb[25].mxu0  ;;  %2997 = vmatmul.mubr.msk.f32.gmra.mrb[20].mxu1 %vm896_vm13, %v3799_v20  ;;  %3075 = vmatmul.mubr.msk.f32.gmra.mrb[120].mxu0 %vm896_vm13, %v3799_v20  ;;  %vm898_vm15 = vcmp.eq.s32.totalorder %v3687_v63, %v4510_v55  ;;  %v1743_v1 = vsel %vm525_vm2, %v1688_v58, 0.0  ;;  %v1690_v17 = vmul.f32 %v4590_v31, %v1658_v11 }
 0x12f   : > { %vm899_vm14 = vcmp.eq.s32.totalorder %v3689_v47, %v4513_v50  ;;  %v3692_v36 = vtrunc.f32 %v748_v3  ;;  %1738 = vadd.xlane.f32.xlu1 %v1737_v46  ;;  %1735 = vadd.xlane.f32.xlu0 %v1734_v48  ;;  %v1755_v21 = vsel %vm525_vm2, %v1692_v59, 0.0  ;;  %v1694_v26 = vmul.f32 %v4590_v31, %v1662_v41 }
 0x130   : > { %v2922_v9 = vsel %vm899_vm14, 1.0, %v3796_v7  ;;  %v3691_v10 = vcvt.f32.s32 %v3690_v2  ;;  %3589 = vmatprep.subr.bf16.mxu1 %v3797_v12  ;;  %v1749_v12 = vsel %vm525_vm2, %v1690_v17, 0.0 }
 0x131   : > { %v3693_v13 = vcvt.f32.s32 %v3692_v36  ;;  %v752_v14 = vpop.f32.mrb[26].mxu0  ;;  %2998 = vmatprep.mubr.msk.f32.mxu1 %vm1320_vm4, %v2922_v9  ;;  %3076 = vmatprep.mubr.msk.f32.mxu0 %vm1320_vm4, %v2922_v9 }
 0x132   : > { %v3694_v54 = vtrunc.f32 %v752_v14  ;;  %v754_v16 = vpop.f32.mrb[27].mxu0  ;;  %2999 = vmatmul.mubr.msk.f32.gmra.mrb[22].mxu1 %vm898_vm15, %v3799_v20  ;;  %3077 = vmatmul.mubr.msk.f32.gmra.mrb[122].mxu0 %vm898_vm15, %v3799_v20  ;;  %vm900_vm3 = vcmp.eq.s32.totalorder %v3691_v10, %v4510_v55 }
 0x133   : > { %vm901_vm1 = vcmp.eq.s32.totalorder %v3693_v13, %v4513_v50  ;;  %v3696_v22 = vtrunc.f32 %v754_v16  ;;  %1744 = vadd.xlane.f32.xlu1 %v1743_v1  ;;  %1741 = vadd.xlane.f32.xlu0 %v1740_v60 }
 0x134   : > { %v3695_v28 = vcvt.f32.s32 %v3694_v54  ;;  %v2924_v5 = vsel %vm901_vm1, 1.0, %v3796_v7  ;;  %3591 = vmatpush3.bf16.msra.mxu1 %v3590_v19 }
 0x135   : > { %v3697_v34 = vcvt.f32.s32 %v3696_v22  ;;  %v758_v37 = vpop.f32.mrb[28].mxu0  ;;  %3000 = vmatprep.mubr.msk.f32.mxu1 %vm1320_vm4, %v2924_v5  ;;  %3078 = vmatprep.mubr.msk.f32.mxu0 %vm1320_vm4, %v2924_v5  ;;  %v1752_v22 = vsel %vm525_vm2, %v1691_v35, 0.0 }
 0x136   : > { %v3698_v44 = vtrunc.f32 %v758_v37  ;;  %v760_v33 = vpop.f32.mrb[29].mxu0  ;;  %3001 = vmatmul.mubr.msk.f32.gmra.mrb[24].mxu1 %vm900_vm3, %v3799_v20  ;;  %3079 = vmatmul.mubr.msk.f32.gmra.mrb[124].mxu0 %vm900_vm3, %v3799_v20  ;;  %vm902_vm6 = vcmp.eq.s32.totalorder %v3695_v28, %v4510_v55  ;;  %v1661_v28 = vmul.f32 %v4254_v38, %v4254_v38  ;;  %v1761_v37 = vsel %vm525_vm2, %v1694_v26, 0.0 }
 0x137   : > { %vm903_vm5 = vcmp.eq.s32.totalorder %v3697_v34, %v4513_v50  ;;  %v3700_v51 = vtrunc.f32 %v760_v33  ;;  %1750 = vadd.xlane.f32.xlu1 %v1749_v12  ;;  %1747 = vadd.xlane.f32.xlu0 %v1746_v6  ;;  %v3766_v12 = vld [vmem:[%s3955_s18 + $0xb0] sm:$0xff] }
 0x138   : > { %v2926_v45 = vsel %vm903_vm5, 1.0, %v3796_v7  ;;  %v3699_v53 = vcvt.f32.s32 %v3698_v44  ;;  %v1693_v40 = vmul.f32 %v4590_v31, %v1661_v28  ;;  %v1663_v6 = vmul.f32 %v3766_v12, %v3766_v12 }
 0x139   : > { %v3701_v43 = vcvt.f32.s32 %v3700_v51  ;;  %v764_v57 = vpop.f32.mrb[30].mxu0  ;;  %3002 = vmatprep.mubr.msk.f32.mxu1 %vm1320_vm4, %v2926_v45  ;;  %3080 = vmatprep.mubr.msk.f32.mxu0 %vm1320_vm4, %v2926_v45 }
 0x13a   : > { %v3702_v61 = vtrunc.f32 %v764_v57  ;;  %v766_v62 = vpop.f32.mrb[31].mxu0  ;;  %3003 = vmatmul.mubr.msk.f32.gmra.mrb[26].mxu1 %vm902_vm6, %v3799_v20  ;;  %3081 = vmatmul.mubr.msk.f32.gmra.mrb[126].mxu0 %vm902_vm6, %v3799_v20  ;;  %vm904_vm8 = vcmp.eq.s32.totalorder %v3699_v53, %v4510_v55  ;;  %v1758_v33 = vsel %vm525_vm2, %v1693_v40, 0.0 }
 0x13b   : > { %vm905_vm7 = vcmp.eq.s32.totalorder %v3701_v43, %v4513_v50  ;;  %v3704_v63 = vtrunc.f32 %v766_v62  ;;  %1756 = vadd.xlane.f32.xlu1 %v1755_v21  ;;  %1753 = vadd.xlane.f32.xlu0 %v1752_v22 }
 0x13c   : > { %v3703_v49 = vcvt.f32.s32 %v3702_v61  ;;  %v2928_v47 = vsel %vm905_vm7, 1.0, %v3796_v7 }
 0x13d   : > { %v3705_v24 = vcvt.f32.s32 %v3704_v63  ;;  %v770_v2 = vpop.f32.mrb[32].mxu0  ;;  %3004 = vmatprep.mubr.msk.f32.mxu1 %vm1320_vm4, %v2928_v47  ;;  %3082 = vmatprep.mubr.msk.f32.mxu0 %vm1320_vm4, %v2928_v47 }
 0x13e   : > { %v3706_v3 = vtrunc.f32 %v770_v2  ;;  %v772_v4 = vpop.f32.mrb[33].mxu0  ;;  %3005 = vmatmul.mubr.msk.f32.gmra.mrb[28].mxu1 %vm904_vm8, %v3799_v20  ;;  %3083 = vmatmul.mubr.msk.f32.gmra.mrb[128].mxu0 %vm904_vm8, %v3799_v20  ;;  %vm906_vm10 = vcmp.eq.s32.totalorder %v3703_v49, %v4510_v55 }
 0x13f   : > { %vm907_vm9 = vcmp.eq.s32.totalorder %v3705_v24, %v4513_v50  ;;  %v3708_v36 = vtrunc.f32 %v772_v4  ;;  %1762 = vadd.xlane.f32.xlu1 %v1761_v37  ;;  %1759 = vadd.xlane.f32.xlu0 %v1758_v33 }
 0x140   : > { %v2930_v9 = vsel %vm907_vm9, 1.0, %v3796_v7  ;;  %v3707_v10 = vcvt.f32.s32 %v3706_v3  ;;  %v3765_v3 = vld [vmem:[%s3955_s18 + $0xb8] sm:$0xff] }
 0x141   : > { %v3709_v13 = vcvt.f32.s32 %v3708_v36  ;;  %v776_v14 = vpop.f32.mrb[34].mxu0  ;;  %3006 = vmatprep.mubr.msk.f32.mxu1 %vm1320_vm4, %v2930_v9  ;;  %3084 = vmatprep.mubr.msk.f32.mxu0 %vm1320_vm4, %v2930_v9  ;;  %v1664_v4 = vmul.f32 %v3765_v3, %v3765_v3 }
 0x142   : > { %v3710_v54 = vtrunc.f32 %v776_v14  ;;  %v778_v16 = vpop.f32.mrb[35].mxu0  ;;  %3007 = vmatmul.mubr.msk.f32.gmra.mrb[30].mxu1 %vm906_vm10, %v3799_v20  ;;  %3085 = vmatmul.mubr.msk.f32.gmra.mrb[130].mxu0 %vm906_vm10, %v3799_v20  ;;  %vm908_vm12 = vcmp.eq.s32.totalorder %v3707_v10, %v4510_v55  ;;  %v1695_v10 = vmul.f32 %v4590_v31, %v1663_v6 }
 0x143   : > { %vm909_vm11 = vcmp.eq.s32.totalorder %v3709_v13, %v4513_v50  ;;  %v3712_v39 = vtrunc.f32 %v778_v16  ;;  %v1696_v9 = vmul.f32 %v4590_v31, %v1664_v4 }
 0x144   : > { %v2932_v25 = vsel %vm909_vm11, 1.0, %v3796_v7  ;;  %v3711_v5 = vcvt.f32.s32 %v3710_v54  ;;  %v1764_v15 = vsel %vm525_vm2, %v1695_v10, 0.0  ;;  %v3767_v54 = vld [vmem:[%s3955_s18 + $0xc0] sm:$0xff]  ;;  %s1773_s18 = sld [smem:[#allocation2]] }
 0x145   : > { %v3713_v42 = vcvt.f32.s32 %v3712_v39  ;;  %v782_v0 = vpop.f32.mrb[36].mxu0  ;;  %3008 = vmatprep.mubr.msk.f32.mxu1 %vm1320_vm4, %v2932_v25  ;;  %3086 = vmatprep.mubr.msk.f32.mxu0 %vm1320_vm4, %v2932_v25  ;;  %v1767_v32 = vsel %vm525_vm2, %v1696_v9, 0.0  ;;  %v1665_v16 = vmul.f32 %v3767_v54, %v3767_v54 }
 0x146   : > { %v3714_v29 = vtrunc.f32 %v782_v0  ;;  %v784_v34 = vpop.f32.mrb[37].mxu0  ;;  %3009 = vmatmul.mubr.msk.f32.gmra.mrb[32].mxu1 %vm908_vm12, %v3799_v20  ;;  %3087 = vmatmul.mubr.msk.f32.gmra.mrb[132].mxu0 %vm908_vm12, %v3799_v20  ;;  %vm910_vm14 = vcmp.eq.s32.totalorder %v3711_v5, %v4510_v55 }
 0x147   : > { %vm911_vm13 = vcmp.eq.s32.totalorder %v3713_v42, %v4513_v50  ;;  %v3716_v38 = vtrunc.f32 %v784_v34  ;;  %1768 = vadd.xlane.f32.xlu1 %v1767_v32  ;;  %1765 = vadd.xlane.f32.xlu0 %v1764_v15  ;;  %v1697_v21 = vmul.f32 %v4590_v31, %v1665_v16 }
 0x148   : > { %v2934_v44 = vsel %vm911_vm13, 1.0, %v3796_v7  ;;  %v3715_v46 = vcvt.f32.s32 %v3714_v29 }
 0x149   : > { %v3717_v48 = vcvt.f32.s32 %v3716_v38  ;;  %v788_v51 = vpop.f32.mrb[38].mxu0  ;;  %3010 = vmatprep.mubr.msk.f32.mxu1 %vm1320_vm4, %v2934_v44  ;;  %3088 = vmatprep.mubr.msk.f32.mxu0 %vm1320_vm4, %v2934_v44  ;;  %v1770_v5 = vsel %vm525_vm2, %v1697_v21, 0.0 }
 0x14a   : > { %v3718_v52 = vtrunc.f32 %v788_v51  ;;  %v790_v23 = vpop.f32.mrb[39].mxu0  ;;  %3011 = vmatmul.mubr.msk.f32.gmra.mrb[34].mxu1 %vm910_vm14, %v3799_v20  ;;  %3089 = vmatmul.mubr.msk.f32.gmra.mrb[134].mxu0 %vm910_vm14, %v3799_v20  ;;  %vm912_vm1 = vcmp.eq.s32.totalorder %v3715_v46, %v4510_v55 }
 0x14b   : > { %vm913_vm15 = vcmp.eq.s32.totalorder %v3717_v48, %v4513_v50  ;;  %v3720_v45 = vtrunc.f32 %v790_v23  ;;  %1771 = vadd.xlane.f32.xlu0 %v1770_v5 }
 0x14c   : > { %v2936_v53 = vsel %vm913_vm15, 1.0, %v3796_v7  ;;  %v3719_v43 = vcvt.f32.s32 %v3718_v52  ;;  %vm1800_vm15 = vcmask 80896  }
 0x14d   : > { %v3721_v57 = vcvt.f32.s32 %v3720_v45  ;;  %v794_v58 = vpop.f32.mrb[40].mxu0  ;;  %3012 = vmatprep.mubr.msk.f32.mxu1 %vm1320_vm4, %v2936_v53  ;;  %3090 = vmatprep.mubr.msk.f32.mxu0 %vm1320_vm4, %v2936_v53 }
 0x14e   : > { %v3722_v18 = vtrunc.f32 %v794_v58  ;;  %v796_v61 = vpop.f32.mrb[41].mxu0  ;;  %3013 = vmatmul.mubr.msk.f32.gmra.mrb[36].mxu1 %vm912_vm1, %v3799_v20  ;;  %3091 = vmatmul.mubr.msk.f32.gmra.mrb[136].mxu0 %vm912_vm1, %v3799_v20  ;;  %vm914_vm5 = vcmp.eq.s32.totalorder %v3719_v43, %v4510_v55  ;;  %vm2768_vm1 = vcmask 7168  }
 0x14f   : > { %vm915_vm3 = vcmp.eq.s32.totalorder %v3721_v57, %v4513_v50  ;;  %v3724_v62 = vtrunc.f32 %v796_v61 }
 0x150   : > { %v2938_v11 = vsel %vm915_vm3, 1.0, %v3796_v7  ;;  %v3723_v56 = vcvt.f32.s32 %v3722_v18 }
 0x151   : > { %v3725_v63 = vcvt.f32.s32 %v3724_v62  ;;  %v800_v1 = vpop.f32.mrb[42].mxu0  ;;  %3014 = vmatprep.mubr.msk.f32.mxu1 %vm1320_vm4, %v2938_v11  ;;  %3092 = vmatprep.mubr.msk.f32.mxu0 %vm1320_vm4, %v2938_v11 }
 0x152   : > { %v3726_v60 = vtrunc.f32 %v800_v1  ;;  %v802_v49 = vpop.f32.mrb[43].mxu0  ;;  %3015 = vmatmul.mubr.msk.f32.gmra.mrb[38].mxu1 %vm914_vm5, %v3799_v20  ;;  %3093 = vmatmul.mubr.msk.f32.gmra.mrb[138].mxu0 %vm914_vm5, %v3799_v20  ;;  %vm916_vm7 = vcmp.eq.s32.totalorder %v3723_v56, %v4510_v55 }
 0x153   : > { %vm917_vm6 = vcmp.eq.s32.totalorder %v3725_v63, %v4513_v50  ;;  %v3728_v47 = vtrunc.f32 %v802_v49 }
 0x154   : > { %v3727_v17 = vcvt.f32.s32 %v3726_v60  ;;  %v2940_v30 = vsel %vm917_vm6, 1.0, %v3796_v7 }
 0x155   : > { %v3729_v24 = vcvt.f32.s32 %v3728_v47  ;;  %v806_v2 = vpop.f32.mrb[44].mxu0  ;;  %3016 = vmatprep.mubr.msk.f32.mxu1 %vm1320_vm4, %v2940_v30  ;;  %3094 = vmatprep.mubr.msk.f32.mxu0 %vm1320_vm4, %v2940_v30 }
 0x156   : > { %v3730_v36 = vtrunc.f32 %v806_v2  ;;  %v808_v8 = vpop.f32.mrb[45].mxu0  ;;  %3017 = vmatmul.mubr.msk.f32.gmra.mrb[40].mxu1 %vm916_vm7, %v3799_v20  ;;  %3095 = vmatmul.mubr.msk.f32.gmra.mrb[140].mxu0 %vm916_vm7, %v3799_v20  ;;  %vm918_vm9 = vcmp.eq.s32.totalorder %v3727_v17, %v4510_v55 }
 0x157   : > { %vm919_vm8 = vcmp.eq.s32.totalorder %v3729_v24, %v4513_v50  ;;  %v3732_v27 = vtrunc.f32 %v808_v8 }
 0x158   : > { %v3731_v13 = vcvt.f32.s32 %v3730_v36  ;;  %v2942_v14 = vsel %vm919_vm8, 1.0, %v3796_v7 }
 0x159   : > { %v3733_v59 = vcvt.f32.s32 %v3732_v27  ;;  %v812_v35 = vpop.f32.mrb[46].mxu0  ;;  %3018 = vmatprep.mubr.msk.f32.mxu1 %vm1320_vm4, %v2942_v14  ;;  %3096 = vmatprep.mubr.msk.f32.mxu0 %vm1320_vm4, %v2942_v14 }
 0x15a   : > { %v3734_v19 = vtrunc.f32 %v812_v35  ;;  %v814_v41 = vpop.f32.mrb[47].mxu0  ;;  %3019 = vmatmul.mubr.msk.f32.gmra.mrb[42].mxu1 %vm918_vm9, %v3799_v20  ;;  %3097 = vmatmul.mubr.msk.f32.gmra.mrb[142].mxu0 %vm918_vm9, %v3799_v20  ;;  %vm920_vm11 = vcmp.eq.s32.totalorder %v3731_v13, %v4510_v55 }
 0x15b   : > { %vm921_vm10 = vcmp.eq.s32.totalorder %v3733_v59, %v4513_v50  ;;  %v3736_v39 = vtrunc.f32 %v814_v41 }
 0x15c   : > { %v2944_v22 = vsel %vm921_vm10, 1.0, %v3796_v7  ;;  %v3735_v25 = vcvt.f32.s32 %v3734_v19 }
 0x15d   : > { %v3737_v26 = vcvt.f32.s32 %v3736_v39  ;;  %v818_v28 = vpop.f32.mrb[48].mxu0  ;;  %3020 = vmatprep.mubr.msk.f32.mxu1 %vm1320_vm4, %v2944_v22  ;;  %3098 = vmatprep.mubr.msk.f32.mxu0 %vm1320_vm4, %v2944_v22 }
 0x15e   : > { %v3738_v42 = vtrunc.f32 %v818_v28  ;;  %v820_v0 = vpop.f32.mrb[49].mxu0  ;;  %3021 = vmatmul.mubr.msk.f32.gmra.mrb[44].mxu1 %vm920_vm11, %v3799_v20  ;;  %3099 = vmatmul.mubr.msk.f32.gmra.mrb[144].mxu0 %vm920_vm11, %v3799_v20  ;;  %vm922_vm13 = vcmp.eq.s32.totalorder %v3735_v25, %v4510_v55 }
 0x15f   : > { %vm923_vm12 = vcmp.eq.s32.totalorder %v3737_v26, %v4513_v50  ;;  %v3740_v31 = vtrunc.f32 %v820_v0 }
 0x160   : > { %v2946_v29 = vsel %vm923_vm12, 1.0, %v3796_v7  ;;  %v3739_v34 = vcvt.f32.s32 %v3738_v42 }
 0x161   : > { %v3741_v37 = vcvt.f32.s32 %v3740_v31  ;;  %3022 = vmatprep.mubr.msk.f32.mxu1 %vm1320_vm4, %v2946_v29  ;;  %3100 = vmatprep.mubr.msk.f32.mxu0 %vm1320_vm4, %v2946_v29  ;;  %v4842_v40 = vpop.f32.mrb[50].mxu0 }
 0x162   : > { %3023 = vmatmul.mubr.msk.f32.gmra.mrb[46].mxu1 %vm922_vm13, %v3799_v20  ;;  %3101 = vmatmul.mubr.msk.f32.gmra.mrb[146].mxu0 %vm922_vm13, %v3799_v20  ;;  %v3308_v38 = vpop.f32.mrb[51].mxu0  ;;  %vm924_vm14 = vcmp.eq.s32.totalorder %v3739_v34, %v4510_v55 }
 0x163   : > { %vm925_vm2 = vcmp.eq.s32.totalorder %v3741_v37, %v4513_v50 }
 0x164   : > { %v2948_v44 = vsel %vm925_vm2, 1.0, %v3796_v7 }
 0x165   : > { %3024 = vmatprep.mubr.msk.f32.mxu1 %vm1320_vm4, %v2948_v44  ;;  %3102 = vmatprep.mubr.msk.f32.mxu0 %vm1320_vm4, %v2948_v44  ;;  %v4851_v33 = vpop.f32.mrb[52].mxu0  ;;  %vm1590_vm4 = vcmp.lt.s32.totalorder %v4510_v55, 8 }
 0x166   : > { %3025 = vmatmul.mubr.msk.f32.gmra.mrb[48].mxu1 %vm924_vm14, %v3799_v20  ;;  %3103 = vmatmul.mubr.msk.f32.gmra.mrb[148].mxu0 %vm924_vm14, %v3799_v20  ;;  %v3311_v46 = vpop.f32.mrb[53].mxu0 }
 0x167   : > { %3413 = vmatprep.mubr.msk.f32.mxu1 %vm3798_vm0, %v3796_v7 }
 0x169   : > { %v4857_v48 = vpop.f32.mrb[54].mxu0 }
 0x16a   : > { %v3314_v50 = vpop.f32.mrb[55].mxu0 }
 0x16d   : > { %v4859_v51 = vpop.f32.mrb[56].mxu0 }
 0x16e   : > { %v3317_v52 = vpop.f32.mrb[57].mxu0 }
 0x171   : > { %v4861_v23 = vpop.f32.mrb[58].mxu0 }
 0x172   : > { %v3320_v45 = vpop.f32.mrb[59].mxu0 }
 0x175   : > { %v4863_v53 = vpop.f32.mrb[60].mxu0 }
 0x176   : > { %v3323_v43 = vpop.f32.mrb[61].mxu0 }
 0x179   : > { %v4865_v57 = vpop.f32.mrb[62].mxu0 }
 0x17a   : > { %v3326_v58 = vpop.f32.mrb[63].mxu0 }
 0x17b   : > { %v4938_v58 = vld [vmem:[%s5440_s9] ss:$0 sm:$0xff] }
 0x17d   : > { %v4867_v20 = vpop.f32.mrb[64].mxu0 }
 0x17e   : > { %v3329_v18 = vpop.f32.mrb[65].mxu0 }
 0x181   : > { %v4869_v61 = vpop.f32.mrb[66].mxu0 }
 0x182   : > { %v3332_v62 = vpop.f32.mrb[67].mxu0 }
 0x185   : > { %v4871_v11 = vpop.f32.mrb[68].mxu0 }
 0x186   : > { %v3335_v56 = vpop.f32.mrb[69].mxu0 }
 0x189   : > { %v4873_v63 = vpop.f32.mrb[70].mxu0 }
 0x18a   : > { %v3338_v1 = vpop.f32.mrb[71].mxu0 }
 0x18d   : > { %v4875_v60 = vpop.f32.mrb[72].mxu0 }
 0x18e   : > { %v3341_v49 = vpop.f32.mrb[73].mxu0 }
 0x18f   : > { %v4942_v49 = vstv %s1773_s18 }
 0x191   : > { %v4877_v47 = vpop.f32.mrb[74].mxu0 }
 0x192   : > { %v3344_v17 = vpop.f32.mrb[75].mxu0 }
 0x195   : > { %v4879_v30 = vpop.f32.mrb[76].mxu0 }
 0x196   : > { %v3347_v24 = vpop.f32.mrb[77].mxu0 }
 0x199   : > { %v4881_v2 = vpop.f32.mrb[78].mxu0 }
 0x19a   : > { %v3350_v3 = vpop.f32.mrb[79].mxu0 }
 0x19d   : > { %v4883_v4 = vpop.f32.mrb[80].mxu0 }
 0x19e   : > { %v3353_v12 = vpop.f32.mrb[81].mxu0 }
 0x1a0   : > { %v4899_v19 = vpop.xlane.xlu1 %1705 }
 0x1a1   : > { %v4885_v6 = vpop.f32.mrb[82].mxu0  ;;  %v4901_v41 = vpop.xlane.xlu0 %1699 }
 0x1a2   : > { %v3356_v36 = vpop.f32.mrb[83].mxu0 }
 0x1a5   : > { %v4887_v8 = vpop.f32.mrb[84].mxu0  ;;  %v4905_v22 = vpop.xlane.xlu1 %1708 }
 0x1a6   : > { %v3359_v27 = vpop.f32.mrb[85].mxu0 }
 0x1a8   : > { %v4907_v25 = vpop.xlane.xlu0 %1702 }
 0x1a9   : > { %v4889_v9 = vpop.f32.mrb[86].mxu0 }
 0x1aa   : > { %v3362_v10 = vpop.f32.mrb[87].mxu0 }
 0x1ac   : > { %v4911_v5 = vpop.xlane.xlu1 %1714  ;;  %v4913_v42 = vpop.xlane.xlu0 %1711 }
 0x1ad   : > { %v4891_v13 = vpop.f32.mrb[88].mxu0 }
 0x1ae   : > { %v3365_v14 = vpop.f32.mrb[89].mxu0 }
 0x1b0   : > { %v4915_v0 = vpop.xlane.xlu1 %1720  ;;  %v4917_v31 = vpop.xlane.xlu0 %1717 }
 0x1b1   : > { %v4893_v59 = vpop.f32.mrb[90].mxu0 }
 0x1b2   : > { %v3368_v35 = vpop.f32.mrb[91].mxu0 }
 0x1b4   : > { %v4919_v29 = vpop.xlane.xlu1 %1726  ;;  %v4921_v34 = vpop.xlane.xlu0 %1723 }
 0x1b5   : > { %v4895_v32 = vpop.f32.mrb[92].mxu0 }
 0x1b6   : > { %v3371_v15 = vpop.f32.mrb[93].mxu0 }
 0x1b8   : > { %v4923_v37 = vpop.xlane.xlu1 %1732  ;;  %v4925_v38 = vpop.xlane.xlu0 %1729 }
 0x1b9   : > { %v4897_v54 = vpop.f32.mrb[94].mxu0 }
 0x1ba   : > { %v3374_v16 = vpop.f32.mrb[95].mxu0 }
 0x1bc   : > { %v4927_v44 = vpop.xlane.xlu1 %1738  ;;  %v4929_v46 = vpop.xlane.xlu0 %1735 }
 0x1bd   : > { %v4903_v39 = vpop.f32.mrb[96].mxu0 }
 0x1be   : > { %v3377_v21 = vpop.f32.mrb[97].mxu0 }
 0x1c0   : > { %v4931_v50 = vpop.xlane.xlu1 %1744  ;;  %v4933_v52 = vpop.xlane.xlu0 %1741 }
 0x1c1   : > { %v4909_v26 = vpop.f32.mrb[98].mxu0 }
 0x1c2   : > { %v3380_v28 = vpop.f32.mrb[99].mxu0 }
 0x1c4   : > { %v1751_v17 = vpop.xlane.xlu1 %1750  ;;  %v1748_v24 = vpop.xlane.xlu0 %1747 }
 0x1c5   : > { %v4948_v36 = vadd.f32 %v4942_v49, %v1751_v17  ;;  %v4951_v27 = vadd.f32 %v4942_v49, %v1748_v24 }
 0x1d9   : > { %v1466_v45 = vpop.f32.mrb[0].mxu1  ;;  %v2189_v43 = vpop.f32.mrb[100].mxu0 }
 0x1da   : > { %v1591_v18 = vmul.f32 %v1466_v45, %v1466_v45  ;;  %v2190_v62 = vadd.f32 %v2189_v43, %v4842_v40  ;;  %v1468_v56 = vpop.f32.mrb[1].mxu1  ;;  %v2191_v1 = vpop.f32.mrb[101].mxu0 }
 0x1db   : > { %v1757_v43 = vpop.xlane.xlu1 %1756 }
 0x1dc   : > { %v2320_v3 = vadd.f32 %v4938_v58, %v2190_v62  ;;  %v1616_v12 = vsel %vm1590_vm4, %v1591_v18, %v1466_v45  ;;  %v1754_v62 = vpop.xlane.xlu0 %1753  ;;  %v4959_v56 = vadd.f32 %v4942_v49, %v1757_v43 }
 0x1dd   : > { %v1471_v10 = vpop.f32.mrb[2].mxu1  ;;  %v2194_v40 = vpop.f32.mrb[102].mxu0  ;;  %v1801_v14 = vsel %vm1800_vm15, %v1616_v12, 0.0  ;;  %v4962_v1 = vadd.f32 %v4942_v49, %v1754_v62 }
 0x1de   : > { %v2345_v35 = vmax.f32 %v2320_v3, 0.0  ;;  %v1592_v15 = vmul.f32 %v1471_v10, %v1471_v10  ;;  %v2195_v16 = vadd.f32 %v2194_v40, %v4851_v33  ;;  %1802 = vadd.xlane.f32.xlu1 %v1801_v14  ;;  %v1473_v21 = vpop.f32.mrb[3].mxu1  ;;  %v2196_v28 = vpop.f32.mrb[103].mxu0 }
 0x1e0   : > { %v2321_v45 = vadd.f32 %v4938_v58, %v2195_v16  ;;  %3414 = vmatmul.mubr.f32.vlgmr.msra.gmra.mrb[50].mxu1 %v2345_v35  ;;  %v1617_v18 = vsel %vm1590_vm4, %v1592_v15, %v1471_v10  ;;  %v1763_v35 = vpop.xlane.xlu1 %1762  ;;  %v1760_v15 = vpop.xlane.xlu0 %1759 }
 0x1e1   : > { %v1476_v17 = vpop.f32.mrb[4].mxu1  ;;  %v2199_v24 = vpop.f32.mrb[104].mxu0  ;;  %v1804_v33 = vsel %vm1800_vm15, %v1617_v18, 0.0  ;;  %3416 = vmatprep.mubr.msk.f32.mxu1 %vm3798_vm0, %v3796_v7  ;;  %v4972_v28 = vadd.f32 %v4942_v49, %v1763_v35  ;;  %v4975_v43 = vadd.f32 %v4942_v49, %v1760_v15 }
 0x1e2   : > { %v2346_v3 = vmax.f32 %v2321_v45, 0.0  ;;  %v1593_v12 = vmul.f32 %v1476_v17, %v1476_v17  ;;  %v2200_v40 = vadd.f32 %v2199_v24, %v4857_v48  ;;  %1805 = vadd.xlane.f32.xlu0 %v1804_v33  ;;  %v1478_v14 = vpop.f32.mrb[5].mxu1  ;;  %v2201_v10 = vpop.f32.mrb[105].mxu0 }
 0x1e4   : > { %v2322_v16 = vadd.f32 %v4938_v58, %v2200_v40  ;;  %3417 = vmatmul.mubr.f32.gmra.mrb[52].mxu1 %v2346_v3  ;;  %v1618_v21 = vsel %vm1590_vm4, %v1593_v12, %v1476_v17  ;;  %v1766_v14 = vpop.xlane.xlu0 %1765 }
 0x1e5   : > { %v1481_v62 = vpop.f32.mrb[6].mxu1  ;;  %v2204_v45 = vpop.f32.mrb[106].mxu0  ;;  %v1807_v48 = vsel %vm1800_vm15, %v1618_v21, 0.0  ;;  %3419 = vmatprep.mubr.msk.f32.mxu1 %vm3798_vm0, %v3796_v7 }
 0x1e6   : > { %v2347_v18 = vmax.f32 %v2322_v16, 0.0  ;;  %v1594_v24 = vmul.f32 %v1481_v62, %v1481_v62  ;;  %v2205_v33 = vadd.f32 %v2204_v45, %v4859_v51  ;;  %1808 = vadd.xlane.f32.xlu1 %v1807_v48  ;;  %v1483_v3 = vpop.f32.mrb[7].mxu1  ;;  %v2206_v17 = vpop.f32.mrb[107].mxu0  ;;  %v4988_v16 = vadd.f32 %v4942_v49, %v1766_v14 }
 0x1e8   : > { %v2323_v12 = vadd.f32 %v4938_v58, %v2205_v33  ;;  %3420 = vmatmul.mubr.f32.gmra.mrb[54].mxu1 %v2347_v18  ;;  %v1619_v40 = vsel %vm1590_vm4, %v1594_v24, %v1481_v62 }
 0x1e9   : > { %v1486_v10 = vpop.f32.mrb[8].mxu1  ;;  %v2209_v35 = vpop.f32.mrb[108].mxu0  ;;  %v1810_v15 = vsel %vm1800_vm15, %v1619_v40, 0.0  ;;  %3422 = vmatprep.mubr.msk.f32.mxu1 %vm3798_vm0, %v3796_v7 }
 0x1ea   : > { %v2348_v51 = vmax.f32 %v2323_v12, 0.0  ;;  %v1595_v21 = vmul.f32 %v1486_v10, %v1486_v10  ;;  %v2210_v45 = vadd.f32 %v2209_v35, %v4861_v23  ;;  %1811 = vadd.xlane.f32.xlu0 %v1810_v15  ;;  %v1488_v48 = vpop.f32.mrb[9].mxu1  ;;  %v2211_v18 = vpop.f32.mrb[109].mxu0 }
 0x1ec   : > { %v2324_v62 = vadd.f32 %v4938_v58, %v2210_v45  ;;  %3423 = vmatmul.mubr.f32.gmra.mrb[56].mxu1 %v2348_v51  ;;  %v1620_v24 = vsel %vm1590_vm4, %v1595_v21, %v1486_v10 }
 0x1ed   : > { %v1491_v33 = vpop.f32.mrb[10].mxu1  ;;  %v2214_v3 = vpop.f32.mrb[110].mxu0  ;;  %v1813_v17 = vsel %vm1800_vm15, %v1620_v24, 0.0  ;;  %3425 = vmatprep.mubr.msk.f32.mxu1 %vm3798_vm0, %v3796_v7 }
 0x1ee   : > { %v2349_v12 = vmax.f32 %v2324_v62, 0.0  ;;  %v1596_v40 = vmul.f32 %v1491_v33, %v1491_v33  ;;  %v2215_v23 = vadd.f32 %v2214_v3, %v4863_v53  ;;  %1814 = vadd.xlane.f32.xlu1 %v1813_v17  ;;  %v1493_v14 = vpop.f32.mrb[11].mxu1  ;;  %v2216_v35 = vpop.f32.mrb[111].mxu0 }
 0x1f0   : > { %v2325_v15 = vadd.f32 %v4938_v58, %v2215_v23  ;;  %3426 = vmatmul.mubr.f32.gmra.mrb[58].mxu1 %v2349_v12  ;;  %v1621_v10 = vsel %vm1590_vm4, %v1596_v40, %v1491_v33 }
 0x1f1   : > { %v1496_v51 = vpop.f32.mrb[12].mxu1  ;;  %v2219_v21 = vpop.f32.mrb[112].mxu0  ;;  %v1816_v45 = vsel %vm1800_vm15, %v1621_v10, 0.0  ;;  %3428 = vmatprep.mubr.msk.f32.mxu1 %vm3798_vm0, %v3796_v7 }
 0x1f2   : > { %v2350_v48 = vmax.f32 %v2325_v15, 0.0  ;;  %v1597_v18 = vmul.f32 %v1496_v51, %v1496_v51  ;;  %v2220_v53 = vadd.f32 %v2219_v21, %v4865_v57  ;;  %1817 = vadd.xlane.f32.xlu0 %v1816_v45  ;;  %v1498_v62 = vpop.f32.mrb[13].mxu1  ;;  %v2221_v24 = vpop.f32.mrb[113].mxu0 }
 0x1f4   : > { %v2326_v3 = vadd.f32 %v4938_v58, %v2220_v53  ;;  %3429 = vmatmul.mubr.f32.gmra.mrb[60].mxu1 %v2350_v48  ;;  %v1622_v33 = vsel %vm1590_vm4, %v1597_v18, %v1496_v51 }
 0x1f5   : > { %v1501_v17 = vpop.f32.mrb[14].mxu1  ;;  %v2224_v12 = vpop.f32.mrb[114].mxu0  ;;  %v1819_v40 = vsel %vm1800_vm15, %v1622_v33, 0.0  ;;  %3431 = vmatprep.mubr.msk.f32.mxu1 %vm3798_vm0, %v3796_v7 }
 0x1f6   : > { %v2351_v23 = vmax.f32 %v2326_v3, 0.0  ;;  %v1598_v14 = vmul.f32 %v1501_v17, %v1501_v17  ;;  %v2225_v57 = vadd.f32 %v2224_v12, %v4867_v20  ;;  %1820 = vadd.xlane.f32.xlu1 %v1819_v40  ;;  %v1503_v35 = vpop.f32.mrb[15].mxu1  ;;  %v2226_v15 = vpop.f32.mrb[115].mxu0 }
 0x1f8   : > { %v2327_v10 = vadd.f32 %v4938_v58, %v2225_v57  ;;  %3432 = vmatmul.mubr.f32.gmra.mrb[62].mxu1 %v2351_v23  ;;  %v1623_v51 = vsel %vm1590_vm4, %v1598_v14, %v1501_v17 }
 0x1f9   : > { %v1506_v21 = vpop.f32.mrb[16].mxu1  ;;  %v2229_v45 = vpop.f32.mrb[116].mxu0  ;;  %v1822_v48 = vsel %vm1800_vm15, %v1623_v51, 0.0  ;;  %3434 = vmatprep.mubr.msk.f32.mxu1 %vm3798_vm0, %v3796_v7 }
 0x1fa   : > { %v2352_v18 = vmax.f32 %v2327_v10, 0.0  ;;  %v1599_v53 = vmul.f32 %v1506_v21, %v1506_v21  ;;  %v2230_v20 = vadd.f32 %v2229_v45, %v4869_v61  ;;  %1823 = vadd.xlane.f32.xlu0 %v1822_v48  ;;  %v1508_v62 = vpop.f32.mrb[17].mxu1  ;;  %v2231_v24 = vpop.f32.mrb[117].mxu0 }
 0x1fc   : > { %v2328_v3 = vadd.f32 %v4938_v58, %v2230_v20  ;;  %3435 = vmatmul.mubr.f32.gmra.mrb[64].mxu1 %v2352_v18  ;;  %v1624_v33 = vsel %vm1590_vm4, %v1599_v53, %v1506_v21 }
 0x1fd   : > { %v1511_v17 = vpop.f32.mrb[18].mxu1  ;;  %v2234_v12 = vpop.f32.mrb[118].mxu0  ;;  %v1825_v40 = vsel %vm1800_vm15, %v1624_v33, 0.0  ;;  %3437 = vmatprep.mubr.msk.f32.mxu1 %vm3798_vm0, %v3796_v7 }
 0x1fe   : > { %v2353_v23 = vmax.f32 %v2328_v3, 0.0  ;;  %v1600_v14 = vmul.f32 %v1511_v17, %v1511_v17  ;;  %v2235_v61 = vadd.f32 %v2234_v12, %v4871_v11  ;;  %1826 = vadd.xlane.f32.xlu1 %v1825_v40  ;;  %v1513_v57 = vpop.f32.mrb[19].mxu1  ;;  %v2236_v35 = vpop.f32.mrb[119].mxu0 }
 0x200   : > { %v2329_v15 = vadd.f32 %v4938_v58, %v2235_v61  ;;  %3438 = vmatmul.mubr.f32.gmra.mrb[66].mxu1 %v2353_v23  ;;  %v1625_v10 = vsel %vm1590_vm4, %v1600_v14, %v1511_v17 }
 0x201   : > { %v1516_v51 = vpop.f32.mrb[20].mxu1  ;;  %v2239_v21 = vpop.f32.mrb[120].mxu0  ;;  %v1828_v45 = vsel %vm1800_vm15, %v1625_v10, 0.0  ;;  %3440 = vmatprep.mubr.msk.f32.mxu1 %vm3798_vm0, %v3796_v7 }
 0x202   : > { %v2354_v48 = vmax.f32 %v2329_v15, 0.0  ;;  %v1601_v18 = vmul.f32 %v1516_v51, %v1516_v51  ;;  %v2240_v11 = vadd.f32 %v2239_v21, %v4873_v63  ;;  %1829 = vadd.xlane.f32.xlu0 %v1828_v45  ;;  %v1518_v53 = vpop.f32.mrb[21].mxu1  ;;  %v2241_v20 = vpop.f32.mrb[121].mxu0 }
 0x204   : > { %v2330_v62 = vadd.f32 %v4938_v58, %v2240_v11  ;;  %3441 = vmatmul.mubr.f32.gmra.mrb[68].mxu1 %v2354_v48  ;;  %v1626_v24 = vsel %vm1590_vm4, %v1601_v18, %v1516_v51 }
 0x205   : > { %v1521_v3 = vpop.f32.mrb[22].mxu1  ;;  %v2244_v33 = vpop.f32.mrb[122].mxu0  ;;  %v1831_v17 = vsel %vm1800_vm15, %v1626_v24, 0.0  ;;  %3443 = vmatprep.mubr.msk.f32.mxu1 %vm3798_vm0, %v3796_v7 }
 0x206   : > { %v2355_v12 = vmax.f32 %v2330_v62, 0.0  ;;  %v1602_v40 = vmul.f32 %v1521_v3, %v1521_v3  ;;  %v2245_v63 = vadd.f32 %v2244_v33, %v4875_v60  ;;  %1832 = vadd.xlane.f32.xlu1 %v1831_v17  ;;  %v1523_v23 = vpop.f32.mrb[23].mxu1  ;;  %v2246_v14 = vpop.f32.mrb[123].mxu0 }
 0x208   : > { %v2331_v61 = vadd.f32 %v4938_v58, %v2245_v63  ;;  %3444 = vmatmul.mubr.f32.gmra.mrb[70].mxu1 %v2355_v12  ;;  %v1627_v57 = vsel %vm1590_vm4, %v1602_v40, %v1521_v3 }
 0x209   : > { %v1526_v35 = vpop.f32.mrb[24].mxu1  ;;  %v2249_v15 = vpop.f32.mrb[124].mxu0  ;;  %v1834_v10 = vsel %vm1800_vm15, %v1627_v57, 0.0  ;;  %3446 = vmatprep.mubr.msk.f32.mxu1 %vm3798_vm0, %v3796_v7 }
 0x20a   : > { %v2356_v51 = vmax.f32 %v2331_v61, 0.0  ;;  %v1603_v21 = vmul.f32 %v1526_v35, %v1526_v35  ;;  %v2250_v60 = vadd.f32 %v2249_v15, %v4877_v47  ;;  %1835 = vadd.xlane.f32.xlu0 %v1834_v10  ;;  %v1528_v45 = vpop.f32.mrb[25].mxu1  ;;  %v2251_v48 = vpop.f32.mrb[125].mxu0 }
 0x20c   : > { %v2332_v18 = vadd.f32 %v4938_v58, %v2250_v60  ;;  %3447 = vmatmul.mubr.f32.gmra.mrb[72].mxu1 %v2356_v51  ;;  %v1628_v11 = vsel %vm1590_vm4, %v1603_v21, %v1526_v35 }
 0x20d   : > { %v1531_v53 = vpop.f32.mrb[26].mxu1  ;;  %v2254_v20 = vpop.f32.mrb[126].mxu0  ;;  %v1837_v62 = vsel %vm1800_vm15, %v1628_v11, 0.0  ;;  %3449 = vmatprep.mubr.msk.f32.mxu1 %vm3798_vm0, %v3796_v7 }
 0x20e   : > { %v2357_v24 = vmax.f32 %v2332_v18, 0.0  ;;  %v1604_v3 = vmul.f32 %v1531_v53, %v1531_v53  ;;  %v2255_v47 = vadd.f32 %v2254_v20, %v4879_v30  ;;  %1838 = vadd.xlane.f32.xlu1 %v1837_v62  ;;  %v1533_v33 = vpop.f32.mrb[27].mxu1  ;;  %v2256_v17 = vpop.f32.mrb[127].mxu0 }
 0x210   : > { %v2333_v12 = vadd.f32 %v4938_v58, %v2255_v47  ;;  %3450 = vmatmul.mubr.f32.gmra.mrb[74].mxu1 %v2357_v24  ;;  %v1629_v40 = vsel %vm1590_vm4, %v1604_v3, %v1531_v53 }
 0x211   : > { %v1536_v63 = vpop.f32.mrb[28].mxu1  ;;  %v2259_v23 = vpop.f32.mrb[128].mxu0  ;;  %v1840_v14 = vsel %vm1800_vm15, %v1629_v40, 0.0  ;;  %3452 = vmatprep.mubr.msk.f32.mxu1 %vm3798_vm0, %v3796_v7 }
 0x212   : > { %v2358_v61 = vmax.f32 %v2333_v12, 0.0  ;;  %v1605_v57 = vmul.f32 %v1536_v63, %v1536_v63  ;;  %v2260_v30 = vadd.f32 %v2259_v23, %v4881_v2  ;;  %1841 = vadd.xlane.f32.xlu0 %v1840_v14  ;;  %v1538_v35 = vpop.f32.mrb[29].mxu1  ;;  %v2261_v15 = vpop.f32.mrb[129].mxu0 }
 0x214   : > { %v2334_v10 = vadd.f32 %v4938_v58, %v2260_v30  ;;  %3453 = vmatmul.mubr.f32.gmra.mrb[76].mxu1 %v2358_v61  ;;  %v1630_v51 = vsel %vm1590_vm4, %v1605_v57, %v1536_v63 }
 0x215   : > { %v1541_v21 = vpop.f32.mrb[30].mxu1  ;;  %v2264_v60 = vpop.f32.mrb[130].mxu0  ;;  %v1843_v45 = vsel %vm1800_vm15, %v1630_v51, 0.0  ;;  %3455 = vmatprep.mubr.msk.f32.mxu1 %vm3798_vm0, %v3796_v7 }
 0x216   : > { %v2359_v48 = vmax.f32 %v2334_v10, 0.0  ;;  %v1606_v18 = vmul.f32 %v1541_v21, %v1541_v21  ;;  %v2265_v2 = vadd.f32 %v2264_v60, %v4883_v4  ;;  %1844 = vadd.xlane.f32.xlu1 %v1843_v45  ;;  %v1543_v11 = vpop.f32.mrb[31].mxu1  ;;  %v2266_v53 = vpop.f32.mrb[131].mxu0 }
 0x218   : > { %v2335_v20 = vadd.f32 %v4938_v58, %v2265_v2  ;;  %3456 = vmatmul.mubr.f32.gmra.mrb[78].mxu1 %v2359_v48  ;;  %v1631_v62 = vsel %vm1590_vm4, %v1606_v18, %v1541_v21 }
 0x219   : > { %v1546_v24 = vpop.f32.mrb[32].mxu1  ;;  %v2269_v3 = vpop.f32.mrb[132].mxu0  ;;  %v1846_v47 = vsel %vm1800_vm15, %v1631_v62, 0.0  ;;  %3458 = vmatprep.mubr.msk.f32.mxu1 %vm3798_vm0, %v3796_v7 }
 0x21a   : > { %v2360_v33 = vmax.f32 %v2335_v20, 0.0  ;;  %v1607_v17 = vmul.f32 %v1546_v24, %v1546_v24  ;;  %v2270_v4 = vadd.f32 %v2269_v3, %v4885_v6  ;;  %1847 = vadd.xlane.f32.xlu0 %v1846_v47  ;;  %v1548_v12 = vpop.f32.mrb[33].mxu1  ;;  %v2271_v40 = vpop.f32.mrb[133].mxu0 }
 0x21c   : > { %v2336_v63 = vadd.f32 %v4938_v58, %v2270_v4  ;;  %3459 = vmatmul.mubr.f32.gmra.mrb[80].mxu1 %v2360_v33  ;;  %v1632_v23 = vsel %vm1590_vm4, %v1607_v17, %v1546_v24 }
 0x21d   : > { %v1551_v14 = vpop.f32.mrb[34].mxu1  ;;  %v2274_v61 = vpop.f32.mrb[134].mxu0  ;;  %v1849_v57 = vsel %vm1800_vm15, %v1632_v23, 0.0  ;;  %3461 = vmatprep.mubr.msk.f32.mxu1 %vm3798_vm0, %v3796_v7 }
 0x21e   : > { %v2361_v30 = vmax.f32 %v2336_v63, 0.0  ;;  %v1608_v35 = vmul.f32 %v1551_v14, %v1551_v14  ;;  %v2275_v6 = vadd.f32 %v2274_v61, %v4887_v8  ;;  %1850 = vadd.xlane.f32.xlu1 %v1849_v57  ;;  %v1553_v15 = vpop.f32.mrb[35].mxu1  ;;  %v2276_v10 = vpop.f32.mrb[135].mxu0 }
 0x220   : > { %v2337_v51 = vadd.f32 %v4938_v58, %v2275_v6  ;;  %3462 = vmatmul.mubr.f32.gmra.mrb[82].mxu1 %v2361_v30  ;;  %v1633_v21 = vsel %vm1590_vm4, %v1608_v35, %v1551_v14 }
 0x221   : > { %v1556_v60 = vpop.f32.mrb[36].mxu1  ;;  %v2279_v45 = vpop.f32.mrb[136].mxu0  ;;  %v1852_v48 = vsel %vm1800_vm15, %v1633_v21, 0.0  ;;  %3464 = vmatprep.mubr.msk.f32.mxu1 %vm3798_vm0, %v3796_v7 }
 0x222   : > { %v2362_v18 = vmax.f32 %v2337_v51, 0.0  ;;  %v1609_v2 = vmul.f32 %v1556_v60, %v1556_v60  ;;  %v2280_v8 = vadd.f32 %v2279_v45, %v4889_v9  ;;  %1853 = vadd.xlane.f32.xlu0 %v1852_v48  ;;  %v1558_v11 = vpop.f32.mrb[37].mxu1  ;;  %v2281_v53 = vpop.f32.mrb[137].mxu0 }
 0x224   : > { %v2338_v20 = vadd.f32 %v4938_v58, %v2280_v8  ;;  %3465 = vmatmul.mubr.f32.gmra.mrb[84].mxu1 %v2362_v18  ;;  %v1634_v62 = vsel %vm1590_vm4, %v1609_v2, %v1556_v60 }
 0x225   : > { %v1561_v24 = vpop.f32.mrb[38].mxu1  ;;  %v2284_v3 = vpop.f32.mrb[138].mxu0  ;;  %v1855_v47 = vsel %vm1800_vm15, %v1634_v62, 0.0  ;;  %3467 = vmatprep.mubr.msk.f32.mxu1 %vm3798_vm0, %v3796_v7 }
 0x226   : > { %v2363_v33 = vmax.f32 %v2338_v20, 0.0  ;;  %v1610_v17 = vmul.f32 %v1561_v24, %v1561_v24  ;;  %v2285_v9 = vadd.f32 %v2284_v3, %v4891_v13  ;;  %1856 = vadd.xlane.f32.xlu1 %v1855_v47  ;;  %v1563_v4 = vpop.f32.mrb[39].mxu1  ;;  %v2286_v12 = vpop.f32.mrb[139].mxu0 }
 0x228   : > { %v2339_v40 = vadd.f32 %v4938_v58, %v2285_v9  ;;  %3468 = vmatmul.mubr.f32.gmra.mrb[86].mxu1 %v2363_v33  ;;  %v1635_v63 = vsel %vm1590_vm4, %v1610_v17, %v1561_v24 }
 0x229   : > { %v1566_v23 = vpop.f32.mrb[40].mxu1  ;;  %v2289_v14 = vpop.f32.mrb[140].mxu0  ;;  %v1858_v61 = vsel %vm1800_vm15, %v1635_v63, 0.0  ;;  %3470 = vmatprep.mubr.msk.f32.mxu1 %vm3798_vm0, %v3796_v7 }
 0x22a   : > { %v2364_v57 = vmax.f32 %v2339_v40, 0.0  ;;  %v1611_v30 = vmul.f32 %v1566_v23, %v1566_v23  ;;  %v2290_v13 = vadd.f32 %v2289_v14, %v4893_v59  ;;  %1859 = vadd.xlane.f32.xlu0 %v1858_v61  ;;  %v1568_v35 = vpop.f32.mrb[41].mxu1  ;;  %v2291_v6 = vpop.f32.mrb[141].mxu0 }
 0x22c   : > { %v2340_v15 = vadd.f32 %v4938_v58, %v2290_v13  ;;  %3471 = vmatmul.mubr.f32.gmra.mrb[88].mxu1 %v2364_v57  ;;  %v1636_v10 = vsel %vm1590_vm4, %v1611_v30, %v1566_v23 }
 0x22d   : > { %v1571_v51 = vpop.f32.mrb[42].mxu1  ;;  %v2294_v21 = vpop.f32.mrb[142].mxu0  ;;  %v1861_v60 = vsel %vm1800_vm15, %v1636_v10, 0.0  ;;  %3473 = vmatprep.mubr.msk.f32.mxu1 %vm3798_vm0, %v3796_v7 }
 0x22e   : > { %v2365_v45 = vmax.f32 %v2340_v15, 0.0  ;;  %v1612_v48 = vmul.f32 %v1571_v51, %v1571_v51  ;;  %v2295_v59 = vadd.f32 %v2294_v21, %v4895_v32  ;;  %1862 = vadd.xlane.f32.xlu1 %v1861_v60  ;;  %v1573_v18 = vpop.f32.mrb[43].mxu1  ;;  %v2296_v2 = vpop.f32.mrb[143].mxu0 }
 0x22f   : > { %v5137_v18 = vpop.xlane.xlu1 %1768 }
 0x230   : > { %v2341_v8 = vadd.f32 %v4938_v58, %v2295_v59  ;;  %3474 = vmatmul.mubr.f32.gmra.mrb[90].mxu1 %v2365_v45  ;;  %v1637_v11 = vsel %vm1590_vm4, %v1612_v48, %v1571_v51 }
 0x231   : > { %v1576_v53 = vpop.f32.mrb[44].mxu1  ;;  %v2299_v20 = vpop.f32.mrb[144].mxu0  ;;  %v1864_v62 = vsel %vm1800_vm15, %v1637_v11, 0.0  ;;  %3476 = vmatprep.mubr.msk.f32.mxu1 %vm3798_vm0, %v3796_v7 }
 0x232   : > { %v2366_v24 = vmax.f32 %v2341_v8, 0.0  ;;  %v1613_v3 = vmul.f32 %v1576_v53, %v1576_v53  ;;  %v2300_v32 = vadd.f32 %v2299_v20, %v4897_v54  ;;  %1865 = vadd.xlane.f32.xlu0 %v1864_v62  ;;  %v1578_v47 = vpop.f32.mrb[45].mxu1  ;;  %v2301_v33 = vpop.f32.mrb[145].mxu0 }
 0x233   : > { %v1784_v47 = vadd.f32 %v4942_v49, %v4919_v29 }
 0x234   : > { %v2342_v17 = vadd.f32 %v4938_v58, %v2300_v32  ;;  %3477 = vmatmul.mubr.f32.gmra.mrb[92].mxu1 %v2366_v24  ;;  %v1638_v9 = vsel %vm1590_vm4, %v1613_v3, %v1576_v53  ;;  %v1783_v24 = vadd.f32 %v4942_v49, %v4921_v34 }
 0x235   : > { %v1581_v4 = vpop.f32.mrb[46].mxu1  ;;  %v2304_v12 = vpop.f32.mrb[146].mxu0  ;;  %v1867_v40 = vsel %vm1800_vm15, %v1638_v9, 0.0  ;;  %3479 = vmatprep.mubr.msk.f32.mxu1 %vm3798_vm0, %v3796_v7  ;;  %v1785_v9 = vadd.f32 %v4942_v49, %v4925_v38 }
 0x236   : > { %v2367_v63 = vmax.f32 %v2342_v17, 0.0  ;;  %v1614_v23 = vmul.f32 %v1581_v4, %v1581_v4  ;;  %v2305_v54 = vadd.f32 %v2304_v12, %v4903_v39  ;;  %1868 = vadd.xlane.f32.xlu1 %v1867_v40  ;;  %v1583_v14 = vpop.f32.mrb[47].mxu1  ;;  %v2306_v61 = vpop.f32.mrb[147].mxu0  ;;  %v1786_v12 = vadd.f32 %v4942_v49, %v4923_v37 }
 0x237   : > { %v1789_v61 = vadd.f32 %v4942_v49, %v4933_v52  ;;  %v5200_v52 = vld [vmem:[%s5442_s11] ss:$0 sm:$0xff] }
 0x238   : > { %v2343_v57 = vadd.f32 %v4938_v58, %v2305_v54  ;;  %3480 = vmatmul.mubr.f32.gmra.mrb[94].mxu1 %v2367_v63  ;;  %v1639_v30 = vsel %vm1590_vm4, %v1614_v23, %v1581_v4  ;;  %v1787_v63 = vadd.f32 %v4942_v49, %v4929_v46  ;;  %v1788_v54 = vadd.f32 %v4942_v49, %v4927_v44 }
 0x239   : > { %v1586_v13 = vpop.f32.mrb[48].mxu1  ;;  %v2309_v35 = vpop.f32.mrb[148].mxu0  ;;  %v1870_v6 = vsel %vm1800_vm15, %v1639_v30, 0.0  ;;  %3482 = vmatprep.mubr.msk.f32.mxu1 %vm3798_vm0, %v3796_v7  ;;  %v1790_v30 = vadd.f32 %v4942_v49, %v4931_v50 }
 0x23a   : > { %v2368_v15 = vmax.f32 %v2343_v57, 0.0  ;;  %v1615_v10 = vmul.f32 %v1586_v13, %v1586_v13  ;;  %v2310_v39 = vadd.f32 %v2309_v35, %v4909_v26  ;;  %1871 = vadd.xlane.f32.xlu0 %v1870_v6  ;;  %v1588_v51 = vpop.f32.mrb[49].mxu1  ;;  %v2311_v21 = vpop.f32.mrb[149].mxu0 }
 0x23b   : > { %v5139_v26 = vpop.xlane.xlu0 %1771 }
 0x23c   : > { %v2344_v60 = vadd.f32 %v4938_v58, %v2310_v39  ;;  %3483 = vmatmul.mubr.f32.gmra.mrb[96].mxu1 %v2368_v15  ;;  %v1640_v45 = vsel %vm1590_vm4, %v1615_v10, %v1586_v13 }
 0x23d   : > { %v1873_v48 = vsel %vm1800_vm15, %v1640_v45, 0.0  ;;  %3485 = vmatprep.mubr.msk.f32.mxu1 %vm3798_vm0, %v3796_v7  ;;  %v1782_v7 = vadd.f32 %v4942_v49, %v4915_v0  ;;  %vm2640_vm0 = vcmask 523264  }
 0x23e   : > { %v2369_v59 = vmax.f32 %v2344_v60, 0.0  ;;  %1874 = vadd.xlane.f32.xlu1 %v1873_v48 }
 0x240   : > { %3486 = vmatmul.mubr.f32.gmra.mrb[98].mxu1 %v2369_v59 }
 0x26b   : > { %v5141_v2 = vpop.xlane.xlu1 %1802 }
 0x26f   : > { %v5143_v8 = vpop.xlane.xlu0 %1805 }
 0x273   : > { %v5145_v58 = vpop.xlane.xlu1 %1808 }
 0x277   : > { %v5147_v55 = vpop.xlane.xlu0 %1811 }
 0x27b   : > { %v5149_v11 = vpop.xlane.xlu1 %1814 }
 0x27f   : > { %v5151_v53 = vpop.xlane.xlu0 %1817 }
 0x283   : > { %v5155_v20 = vpop.xlane.xlu1 %1820 }
 0x287   : > { %v1824_v62 = vpop.xlane.xlu0 %1823 }
 0x288   : > { %v5159_v3 = vadd.f32 %v1824_v62, %v1782_v7 }
 0x28b   : > { %v1827_v32 = vpop.xlane.xlu1 %1826 }
 0x28c   : > { %v5163_v33 = vadd.f32 %v1827_v32, %v1783_v24 }
 0x28f   : > { %v1830_v17 = vpop.xlane.xlu0 %1829 }
 0x290   : > { %v5167_v4 = vadd.f32 %v1830_v17, %v1784_v47 }
 0x293   : > { %v1833_v0 = vpop.xlane.xlu1 %1832 }
 0x294   : > { %v5171_v40 = vadd.f32 %v1833_v0, %v1785_v9 }
 0x297   : > { %v1836_v34 = vpop.xlane.xlu0 %1835 }
 0x298   : > { %v5175_v23 = vadd.f32 %v1836_v34, %v1786_v12 }
 0x29b   : > { %v1839_v29 = vpop.xlane.xlu1 %1838 }
 0x29c   : > { %v5179_v14 = vadd.f32 %v1839_v29, %v1787_v63 }
 0x29f   : > { %v1842_v38 = vpop.xlane.xlu0 %1841 }
 0x2a0   : > { %v5183_v57 = vadd.f32 %v1842_v38, %v1788_v54 }
 0x2a3   : > { %v1845_v37 = vpop.xlane.xlu1 %1844 }
 0x2a4   : > { %v5187_v13 = vadd.f32 %v1845_v37, %v1789_v61 }
 0x2a7   : > { %v1848_v46 = vpop.xlane.xlu0 %1847 }
 0x2a8   : > { %v5189_v35 = vadd.f32 %v1848_v46, %v1790_v30 }
 0x2ab   : > { %v1851_v6 = vpop.xlane.xlu1 %1850 }
 0x2ac   : > { %v5192_v44 = vadd.f32 %v1851_v6, %v4951_v27  ;;  %v5209_v27 = vld [vmem:[%s5443_s12] ss:$0 sm:$0xff] }
 0x2af   : > { %v1854_v15 = vpop.xlane.xlu0 %1853 }
 0x2b0   : > { %v5195_v10 = vadd.f32 %v1854_v15, %v4948_v36 }
 0x2b3   : > { %v1857_v39 = vpop.xlane.xlu1 %1856  ;;  %v2459_v50 = vpop.f32.mrb[50].mxu1 }
 0x2b4   : > { %v5203_v51 = vadd.f32 %v1857_v39, %v4962_v1  ;;  %v2460_v21 = vadd.f32 %v5200_v52, %v2459_v50  ;;  %v3415_v60 = vpop.f32.mrb[51].mxu1 }
 0x2b6   : > { %v2583_v36 = vmax.f32 %v2460_v21, 0.0 }
 0x2b7   : > { %v1860_v45 = vpop.xlane.xlu0 %1859  ;;  %v2464_v48 = vpop.f32.mrb[52].mxu1 }
 0x2b8   : > { %v5212_v59 = vadd.f32 %v1860_v45, %v4959_v56  ;;  %v2465_v7 = vadd.f32 %v5200_v52, %v2464_v48  ;;  %v3418_v62 = vpop.f32.mrb[53].mxu1  ;;  %v2615_v1 = vmul.f32 %v5209_v27, %v2583_v36 }
 0x2ba   : > { %v2584_v24 = vmax.f32 %v2465_v7, 0.0  ;;  %v2641_v32 = vsel %vm2640_vm0, %v2615_v1, 0.0 }
 0x2bb   : > { %v1863_v47 = vpop.xlane.xlu1 %1862  ;;  %2642 = vadd.xlane.f32.xlu0 %v2641_v32  ;;  %v2469_v17 = vpop.f32.mrb[54].mxu1 }
 0x2bc   : > { %v5218_v9 = vadd.f32 %v1863_v47, %v4975_v43  ;;  %v2470_v0 = vadd.f32 %v5200_v52, %v2469_v17  ;;  %v3421_v12 = vpop.f32.mrb[55].mxu1  ;;  %v2616_v56 = vmul.f32 %v5209_v27, %v2584_v24 }
 0x2be   : > { %v2585_v34 = vmax.f32 %v2470_v0, 0.0  ;;  %v2644_v63 = vsel %vm2640_vm0, %v2616_v56, 0.0 }
 0x2bf   : > { %v1866_v29 = vpop.xlane.xlu0 %1865  ;;  %2645 = vadd.xlane.f32.xlu1 %v2644_v63  ;;  %v2474_v54 = vpop.f32.mrb[56].mxu1 }
 0x2c0   : > { %v5224_v38 = vadd.f32 %v1866_v29, %v4972_v28  ;;  %v2475_v61 = vadd.f32 %v5200_v52, %v2474_v54  ;;  %v3424_v37 = vpop.f32.mrb[57].mxu1  ;;  %v2617_v43 = vmul.f32 %v5209_v27, %v2585_v34 }
 0x2c2   : > { %v2586_v30 = vmax.f32 %v2475_v61, 0.0  ;;  %v2647_v46 = vsel %vm2640_vm0, %v2617_v43, 0.0 }
 0x2c3   : > { %v1869_v6 = vpop.xlane.xlu1 %1868  ;;  %2648 = vadd.xlane.f32.xlu0 %v2647_v46  ;;  %v2479_v15 = vpop.f32.mrb[58].mxu1 }
 0x2c4   : > { %v5230_v39 = vadd.f32 %v1869_v6, %v4988_v16  ;;  %v2480_v50 = vadd.f32 %v5200_v52, %v2479_v15  ;;  %v3427_v21 = vpop.f32.mrb[59].mxu1  ;;  %v2618_v28 = vmul.f32 %v5209_v27, %v2586_v30 }
 0x2c6   : > { %v2587_v60 = vmax.f32 %v2480_v50, 0.0  ;;  %v2650_v36 = vsel %vm2640_vm0, %v2618_v28, 0.0 }
 0x2c7   : > { %2651 = vadd.xlane.f32.xlu1 %v2650_v36  ;;  %v2484_v45 = vpop.f32.mrb[60].mxu1 }
 0x2c8   : > { %v2485_v48 = vadd.f32 %v5200_v52, %v2484_v45  ;;  %v3430_v7 = vpop.f32.mrb[61].mxu1  ;;  %v2619_v62 = vmul.f32 %v5209_v27, %v2587_v60 }
 0x2ca   : > { %v2588_v1 = vmax.f32 %v2485_v48, 0.0  ;;  %v2653_v24 = vsel %vm2640_vm0, %v2619_v62, 0.0 }
 0x2cb   : > { %2654 = vadd.xlane.f32.xlu0 %v2653_v24  ;;  %v2489_v16 = vpop.f32.mrb[62].mxu1 }
 0x2cc   : > { %v2490_v32 = vadd.f32 %v5200_v52, %v2489_v16  ;;  %v3433_v47 = vpop.f32.mrb[63].mxu1  ;;  %v2620_v17 = vmul.f32 %v5209_v27, %v2588_v1 }
 0x2ce   : > { %v2589_v0 = vmax.f32 %v2490_v32, 0.0  ;;  %v2656_v12 = vsel %vm2640_vm0, %v2620_v17, 0.0 }
 0x2cf   : > { %2657 = vadd.xlane.f32.xlu1 %v2656_v12  ;;  %v2494_v56 = vpop.f32.mrb[64].mxu1 }
 0x2d0   : > { %v2495_v34 = vadd.f32 %v5200_v52, %v2494_v56  ;;  %v3436_v63 = vpop.f32.mrb[65].mxu1  ;;  %v2621_v29 = vmul.f32 %v5209_v27, %v2589_v0 }
 0x2d2   : > { %v2590_v54 = vmax.f32 %v2495_v34, 0.0  ;;  %v2659_v61 = vsel %vm2640_vm0, %v2621_v29, 0.0 }
 0x2d3   : > { %2660 = vadd.xlane.f32.xlu0 %v2659_v61  ;;  %v2499_v37 = vpop.f32.mrb[66].mxu1 }
 0x2d4   : > { %v2500_v43 = vadd.f32 %v5200_v52, %v2499_v37  ;;  %v3439_v30 = vpop.f32.mrb[67].mxu1  ;;  %v2622_v46 = vmul.f32 %v5209_v27, %v2590_v54 }
 0x2d6   : > { %v2591_v6 = vmax.f32 %v2500_v43, 0.0  ;;  %v2662_v15 = vsel %vm2640_vm0, %v2622_v46, 0.0 }
 0x2d7   : > { %2663 = vadd.xlane.f32.xlu1 %v2662_v15  ;;  %v2504_v50 = vpop.f32.mrb[68].mxu1 }
 0x2d8   : > { %v2505_v21 = vadd.f32 %v5200_v52, %v2504_v50  ;;  %v3442_v28 = vpop.f32.mrb[69].mxu1  ;;  %v2623_v60 = vmul.f32 %v5209_v27, %v2591_v6 }
 0x2da   : > { %v2592_v36 = vmax.f32 %v2505_v21, 0.0  ;;  %v2665_v45 = vsel %vm2640_vm0, %v2623_v60, 0.0 }
 0x2db   : > { %2666 = vadd.xlane.f32.xlu0 %v2665_v45  ;;  %v2509_v48 = vpop.f32.mrb[70].mxu1 }
 0x2dc   : > { %v2510_v7 = vadd.f32 %v5200_v52, %v2509_v48  ;;  %v3445_v62 = vpop.f32.mrb[71].mxu1  ;;  %v2624_v1 = vmul.f32 %v5209_v27, %v2592_v36 }
 0x2de   : > { %v2593_v24 = vmax.f32 %v2510_v7, 0.0  ;;  %v2668_v16 = vsel %vm2640_vm0, %v2624_v1, 0.0 }
 0x2df   : > { %2669 = vadd.xlane.f32.xlu1 %v2668_v16  ;;  %v2514_v32 = vpop.f32.mrb[72].mxu1 }
 0x2e0   : > { %v2515_v47 = vadd.f32 %v5200_v52, %v2514_v32  ;;  %v3448_v17 = vpop.f32.mrb[73].mxu1  ;;  %v2625_v0 = vmul.f32 %v5209_v27, %v2593_v24 }
 0x2e2   : > { %v2594_v12 = vmax.f32 %v2515_v47, 0.0  ;;  %v2671_v56 = vsel %vm2640_vm0, %v2625_v0, 0.0 }
 0x2e3   : > { %2672 = vadd.xlane.f32.xlu0 %v2671_v56  ;;  %v2519_v34 = vpop.f32.mrb[74].mxu1 }
 0x2e4   : > { %v2520_v63 = vadd.f32 %v5200_v52, %v2519_v34  ;;  %v3451_v29 = vpop.f32.mrb[75].mxu1  ;;  %v2626_v54 = vmul.f32 %v5209_v27, %v2594_v12 }
 0x2e6   : > { %v2595_v61 = vmax.f32 %v2520_v63, 0.0  ;;  %v2674_v37 = vsel %vm2640_vm0, %v2626_v54, 0.0 }
 0x2e7   : > { %2675 = vadd.xlane.f32.xlu1 %v2674_v37  ;;  %v2524_v43 = vpop.f32.mrb[76].mxu1 }
 0x2e8   : > { %v2525_v30 = vadd.f32 %v5200_v52, %v2524_v43  ;;  %v3454_v46 = vpop.f32.mrb[77].mxu1  ;;  %v2627_v6 = vmul.f32 %v5209_v27, %v2595_v61 }
 0x2ea   : > { %v2596_v15 = vmax.f32 %v2525_v30, 0.0  ;;  %v2677_v50 = vsel %vm2640_vm0, %v2627_v6, 0.0 }
 0x2eb   : > { %2678 = vadd.xlane.f32.xlu0 %v2677_v50  ;;  %v2529_v21 = vpop.f32.mrb[78].mxu1 }
 0x2ec   : > { %v2530_v28 = vadd.f32 %v5200_v52, %v2529_v21  ;;  %v3457_v60 = vpop.f32.mrb[79].mxu1  ;;  %v2628_v36 = vmul.f32 %v5209_v27, %v2596_v15 }
 0x2ee   : > { %v2597_v45 = vmax.f32 %v2530_v28, 0.0  ;;  %v2680_v48 = vsel %vm2640_vm0, %v2628_v36, 0.0 }
 0x2ef   : > { %2681 = vadd.xlane.f32.xlu1 %v2680_v48  ;;  %v2534_v7 = vpop.f32.mrb[80].mxu1 }
 0x2f0   : > { %v2535_v62 = vadd.f32 %v5200_v52, %v2534_v7  ;;  %v3460_v1 = vpop.f32.mrb[81].mxu1  ;;  %v2629_v24 = vmul.f32 %v5209_v27, %v2597_v45 }
 0x2f2   : > { %v2598_v16 = vmax.f32 %v2535_v62, 0.0  ;;  %v2683_v32 = vsel %vm2640_vm0, %v2629_v24, 0.0 }
 0x2f3   : > { %2684 = vadd.xlane.f32.xlu0 %v2683_v32  ;;  %v2539_v47 = vpop.f32.mrb[82].mxu1 }
 0x2f4   : > { %v2540_v17 = vadd.f32 %v5200_v52, %v2539_v47  ;;  %v3463_v0 = vpop.f32.mrb[83].mxu1  ;;  %v2630_v12 = vmul.f32 %v5209_v27, %v2598_v16 }
 0x2f6   : > { %v2599_v56 = vmax.f32 %v2540_v17, 0.0  ;;  %v2686_v34 = vsel %vm2640_vm0, %v2630_v12, 0.0 }
 0x2f7   : > { %2687 = vadd.xlane.f32.xlu1 %v2686_v34  ;;  %v2544_v63 = vpop.f32.mrb[84].mxu1 }
 0x2f8   : > { %v2545_v29 = vadd.f32 %v5200_v52, %v2544_v63  ;;  %v3466_v54 = vpop.f32.mrb[85].mxu1  ;;  %v2631_v61 = vmul.f32 %v5209_v27, %v2599_v56 }
 0x2fa   : > { %v2600_v37 = vmax.f32 %v2545_v29, 0.0  ;;  %v2689_v43 = vsel %vm2640_vm0, %v2631_v61, 0.0 }
 0x2fb   : > { %2690 = vadd.xlane.f32.xlu0 %v2689_v43  ;;  %v2549_v30 = vpop.f32.mrb[86].mxu1 }
 0x2fc   : > { %v2550_v46 = vadd.f32 %v5200_v52, %v2549_v30  ;;  %v3469_v6 = vpop.f32.mrb[87].mxu1  ;;  %v2632_v15 = vmul.f32 %v5209_v27, %v2600_v37 }
 0x2fe   : > { %v2601_v50 = vmax.f32 %v2550_v46, 0.0  ;;  %v2692_v21 = vsel %vm2640_vm0, %v2632_v15, 0.0 }
 0x2ff   : > { %2693 = vadd.xlane.f32.xlu1 %v2692_v21  ;;  %v2554_v28 = vpop.f32.mrb[88].mxu1 }
 0x300   : > { %v2555_v60 = vadd.f32 %v5200_v52, %v2554_v28  ;;  %v3472_v36 = vpop.f32.mrb[89].mxu1  ;;  %v2633_v45 = vmul.f32 %v5209_v27, %v2601_v50 }
 0x302   : > { %v2602_v48 = vmax.f32 %v2555_v60, 0.0  ;;  %v2695_v7 = vsel %vm2640_vm0, %v2633_v45, 0.0 }
 0x303   : > { %2696 = vadd.xlane.f32.xlu0 %v2695_v7  ;;  %v2559_v62 = vpop.f32.mrb[90].mxu1 }
 0x304   : > { %v2560_v1 = vadd.f32 %v5200_v52, %v2559_v62  ;;  %v3475_v24 = vpop.f32.mrb[91].mxu1  ;;  %v2634_v16 = vmul.f32 %v5209_v27, %v2602_v48 }
 0x306   : > { %v2603_v32 = vmax.f32 %v2560_v1, 0.0  ;;  %v2698_v47 = vsel %vm2640_vm0, %v2634_v16, 0.0  ;;  %v5297_v16 = vpop.xlane.xlu0 %1871 }
 0x307   : > { %2699 = vadd.xlane.f32.xlu1 %v2698_v47  ;;  %v2564_v17 = vpop.f32.mrb[92].mxu1  ;;  %v5303_v47 = vpop.xlane.xlu1 %1874 }
 0x308   : > { %v2565_v0 = vadd.f32 %v5200_v52, %v2564_v17  ;;  %v3478_v12 = vpop.f32.mrb[93].mxu1  ;;  %v2635_v56 = vmul.f32 %v5209_v27, %v2603_v32  ;;  %v1775_v32 = vadd.f32 %v4942_v49, %v4901_v41 }
 0x30a   : > { %v2604_v34 = vmax.f32 %v2565_v0, 0.0  ;;  %v2701_v63 = vsel %vm2640_vm0, %v2635_v56, 0.0  ;;  %v1776_v0 = vadd.f32 %v4942_v49, %v4907_v25  ;;  %v1876_v12 = vadd.f32 %v5141_v2, %v1775_v32 }
 0x30b   : > { %2702 = vadd.xlane.f32.xlu0 %v2701_v63  ;;  %v2569_v29 = vpop.f32.mrb[94].mxu1 }
 0x30c   : > { %v2570_v54 = vadd.f32 %v5200_v52, %v2569_v29  ;;  %v3481_v61 = vpop.f32.mrb[95].mxu1  ;;  %v2636_v37 = vmul.f32 %v5209_v27, %v2604_v34  ;;  %v1777_v34 = vadd.f32 %v4942_v49, %v4899_v19  ;;  %v1877_v25 = vadd.f32 %v5143_v8, %v1776_v0 }
 0x30d   : > { %v1779_v8 = vadd.f32 %v4942_v49, %v4913_v42 }
 0x30e   : > { %v2605_v43 = vmax.f32 %v2570_v54, 0.0  ;;  %v2704_v30 = vsel %vm2640_vm0, %v2636_v37, 0.0  ;;  %v1778_v54 = vadd.f32 %v4942_v49, %v4905_v22  ;;  %v1878_v61 = vadd.f32 %v5145_v58, %v1777_v34 }
 0x30f   : > { %2705 = vadd.xlane.f32.xlu1 %v2704_v30  ;;  %v2574_v46 = vpop.f32.mrb[96].mxu1  ;;  %v1780_v58 = vadd.f32 %v4942_v49, %v4911_v5 }
 0x310   : > { %v2575_v6 = vadd.f32 %v5200_v52, %v2574_v46  ;;  %v3484_v15 = vpop.f32.mrb[97].mxu1  ;;  %v2637_v50 = vmul.f32 %v5209_v27, %v2605_v43  ;;  %v1879_v30 = vadd.f32 %v5147_v55, %v1778_v54  ;;  %v1781_v55 = vadd.f32 %v4942_v49, %v4917_v31 }
 0x311   : > { %v1880_v15 = vadd.f32 %v5149_v11, %v1779_v8 }
 0x312   : > { %v2606_v21 = vmax.f32 %v2575_v6, 0.0  ;;  %v2707_v28 = vsel %vm2640_vm0, %v2637_v50, 0.0 }
 0x313   : > { %2708 = vadd.xlane.f32.xlu0 %v2707_v28  ;;  %v2579_v60 = vpop.f32.mrb[98].mxu1  ;;  %v1881_v28 = vadd.f32 %v5151_v53, %v1780_v58 }
 0x314   : > { %v2580_v36 = vadd.f32 %v5200_v52, %v2579_v60  ;;  %v3487_v45 = vpop.f32.mrb[99].mxu1  ;;  %v2638_v48 = vmul.f32 %v5209_v27, %v2606_v21  ;;  %v5301_v52 = vstv %s3107_s14 }
 0x316   : > { %v2607_v7 = vmax.f32 %v2580_v36, 0.0  ;;  %v2710_v62 = vsel %vm2640_vm0, %v2638_v48, 0.0  ;;  %v1882_v36 = vadd.f32 %v5155_v20, %v1781_v55 }
 0x317   : > { %2711 = vadd.xlane.f32.xlu1 %v2710_v62 }
 0x318   : > { %v2639_v1 = vmul.f32 %v5209_v27, %v2607_v7 }
 0x31a   : > { %v2713_v24 = vsel %vm2640_vm0, %v2639_v1, 0.0 }
 0x31b   : > { %2714 = vadd.xlane.f32.xlu0 %v2713_v24 }
 0x348   : > { %v2643_v17 = vpop.xlane.xlu0 %2642 }
 0x349   : > { %v2718_v27 = vadd.f32 %v5301_v52, %v2643_v17 }
 0x34b   : > { %v2743_v41 = vadd.f32 %v2718_v27, %v1876_v12 }
 0x34c   : > { %v2646_v56 = vpop.xlane.xlu1 %2645 }
 0x34d   : > { %2769 = vst.msk [vmem:[%s5314_s16] sm:$0xff] %vm2768_vm1, %v2743_v41  ;;  %v2719_v2 = vadd.f32 %v5301_v52, %v2646_v56 }
 0x34f   : > { %v2744_v63 = vadd.f32 %v2719_v2, %v1877_v25 }
 0x350   : > { %v2649_v29 = vpop.xlane.xlu0 %2648 }
 0x351   : > { %2770 = vst.msk [vmem:[%s5314_s16 + $0x8] sm:$0xff] %vm2768_vm1, %v2744_v63  ;;  %v2720_v37 = vadd.f32 %v5301_v52, %v2649_v29 }
 0x353   : > { %v2745_v43 = vadd.f32 %v2720_v37, %v1878_v61 }
 0x354   : > { %v2652_v19 = vpop.xlane.xlu1 %2651 }
 0x355   : > { %2771 = vst.msk [vmem:[%s5314_s16 + $0x10] sm:$0xff] %vm2768_vm1, %v2745_v43  ;;  %v2721_v46 = vadd.f32 %v5301_v52, %v2652_v19 }
 0x357   : > { %v2746_v22 = vadd.f32 %v2721_v46, %v1879_v30 }
 0x358   : > { %v2655_v6 = vpop.xlane.xlu0 %2654 }
 0x359   : > { %2772 = vst.msk [vmem:[%s5314_s16 + $0x18] sm:$0xff] %vm2768_vm1, %v2746_v22  ;;  %v2722_v50 = vadd.f32 %v5301_v52, %v2655_v6 }
 0x35b   : > { %v2747_v42 = vadd.f32 %v2722_v50, %v1880_v15 }
 0x35c   : > { %v2658_v21 = vpop.xlane.xlu1 %2657 }
 0x35d   : > { %2773 = vst.msk [vmem:[%s5314_s16 + $0x20] sm:$0xff] %vm2768_vm1, %v2747_v42  ;;  %v2723_v60 = vadd.f32 %v5301_v52, %v2658_v21 }
 0x35f   : > { %v2748_v5 = vadd.f32 %v2723_v60, %v1881_v28  ;;  %v1799_v60 = vadd.f32 %v4942_v49, %v5139_v26 }
 0x360   : > { %v2661_v11 = vpop.xlane.xlu0 %2660 }
 0x361   : > { %2774 = vst.msk [vmem:[%s5314_s16 + $0x28] sm:$0xff] %vm2768_vm1, %v2748_v5  ;;  %v2724_v45 = vadd.f32 %v5301_v52, %v2661_v11 }
 0x363   : > { %v2749_v48 = vadd.f32 %v2724_v45, %v1882_v36 }
 0x364   : > { %v2664_v7 = vpop.xlane.xlu1 %2663 }
 0x365   : > { %2775 = vst.msk [vmem:[%s5314_s16 + $0x30] sm:$0xff] %vm2768_vm1, %v2749_v48  ;;  %v2725_v31 = vadd.f32 %v5301_v52, %v2664_v7 }
 0x367   : > { %v2750_v53 = vadd.f32 %v2725_v31, %v5159_v3 }
 0x368   : > { %v2667_v62 = vpop.xlane.xlu0 %2666 }
 0x369   : > { %2776 = vst.msk [vmem:[%s5314_s16 + $0x38] sm:$0xff] %vm2768_vm1, %v2750_v53  ;;  %v2726_v20 = vadd.f32 %v5301_v52, %v2667_v62 }
 0x36b   : > { %v2751_v1 = vadd.f32 %v2726_v20, %v5163_v33 }
 0x36c   : > { %v2670_v24 = vpop.xlane.xlu1 %2669 }
 0x36d   : > { %2777 = vst.msk [vmem:[%s5314_s16 + $0x40] sm:$0xff] %vm2768_vm1, %v2751_v1  ;;  %v2727_v32 = vadd.f32 %v5301_v52, %v2670_v24 }
 0x36f   : > { %v2752_v17 = vadd.f32 %v2727_v32, %v5167_v4 }
 0x370   : > { %v2673_v0 = vpop.xlane.xlu0 %2672 }
 0x371   : > { %2778 = vst.msk [vmem:[%s5314_s16 + $0x48] sm:$0xff] %vm2768_vm1, %v2752_v17  ;;  %v2728_v3 = vadd.f32 %v5301_v52, %v2673_v0 }
 0x373   : > { %v2753_v12 = vadd.f32 %v2728_v3, %v5171_v40 }
 0x374   : > { %v2676_v27 = vpop.xlane.xlu1 %2675 }
 0x375   : > { %2779 = vst.msk [vmem:[%s5314_s16 + $0x50] sm:$0xff] %vm2768_vm1, %v2753_v12  ;;  %v2729_v33 = vadd.f32 %v5301_v52, %v2676_v27 }
 0x377   : > { %v2754_v41 = vadd.f32 %v2729_v33, %v5175_v23 }
 0x378   : > { %v2679_v56 = vpop.xlane.xlu0 %2678 }
 0x379   : > { %2780 = vst.msk [vmem:[%s5314_s16 + $0x58] sm:$0xff] %vm2768_vm1, %v2754_v41  ;;  %v2730_v4 = vadd.f32 %v5301_v52, %v2679_v56 }
 0x37b   : > { %v2755_v34 = vadd.f32 %v2730_v4, %v5179_v14 }
 0x37c   : > { %v2682_v25 = vpop.xlane.xlu1 %2681 }
 0x37d   : > { %2781 = vst.msk [vmem:[%s5314_s16 + $0x60] sm:$0xff] %vm2768_vm1, %v2755_v34  ;;  %v2731_v40 = vadd.f32 %v5301_v52, %v2682_v25 }
 0x37f   : > { %v2756_v2 = vadd.f32 %v2731_v40, %v5183_v57 }
 0x380   : > { %v2685_v63 = vpop.xlane.xlu0 %2684 }
 0x381   : > { %2782 = vst.msk [vmem:[%s5314_s16 + $0x68] sm:$0xff] %vm2768_vm1, %v2756_v2  ;;  %v2732_v23 = vadd.f32 %v5301_v52, %v2685_v63 }
 0x383   : > { %v2757_v29 = vadd.f32 %v2732_v23, %v5187_v13 }
 0x384   : > { %v2688_v54 = vpop.xlane.xlu1 %2687 }
 0x385   : > { %2783 = vst.msk [vmem:[%s5314_s16 + $0x70] sm:$0xff] %vm2768_vm1, %v2757_v29  ;;  %v2733_v14 = vadd.f32 %v5301_v52, %v2688_v54 }
 0x387   : > { %v2758_v61 = vadd.f32 %v2733_v14, %v5189_v35 }
 0x388   : > { %v2691_v37 = vpop.xlane.xlu0 %2690 }
 0x389   : > { %2784 = vst.msk [vmem:[%s5314_s16 + $0x78] sm:$0xff] %vm2768_vm1, %v2758_v61  ;;  %v2734_v57 = vadd.f32 %v5301_v52, %v2691_v37 }
 0x38b   : > { %v2759_v43 = vadd.f32 %v2734_v57, %v5192_v44 }
 0x38c   : > { %v2694_v19 = vpop.xlane.xlu1 %2693 }
 0x38d   : > { %2785 = vst.msk [vmem:[%s5314_s16 + $0x80] sm:$0xff] %vm2768_vm1, %v2759_v43  ;;  %v2735_v13 = vadd.f32 %v5301_v52, %v2694_v19 }
 0x38f   : > { %v2760_v8 = vadd.f32 %v2735_v13, %v5195_v10 }
 0x390   : > { %v2697_v30 = vpop.xlane.xlu0 %2696 }
 0x391   : > { %2786 = vst.msk [vmem:[%s5314_s16 + $0x88] sm:$0xff] %vm2768_vm1, %v2760_v8  ;;  %v2736_v35 = vadd.f32 %v5301_v52, %v2697_v30 }
 0x393   : > { %v2761_v46 = vadd.f32 %v2736_v35, %v5203_v51 }
 0x394   : > { %v2700_v22 = vpop.xlane.xlu1 %2699 }
 0x395   : > { %2787 = vst.msk [vmem:[%s5314_s16 + $0x90] sm:$0xff] %vm2768_vm1, %v2761_v46  ;;  %v2737_v44 = vadd.f32 %v5301_v52, %v2700_v22 }
 0x397   : > { %v2762_v6 = vadd.f32 %v2737_v44, %v5212_v59  ;;  %v1798_v59 = vadd.f32 %v4942_v49, %v5137_v18  ;;  %v1900_v18 = vadd.f32 %v5303_v47, %v1799_v60 }
 0x398   : > { %v2703_v58 = vpop.xlane.xlu0 %2702 }
 0x399   : > { %2788 = vst.msk [vmem:[%s5314_s16 + $0x98] sm:$0xff] %vm2768_vm1, %v2762_v6  ;;  %v2738_v10 = vadd.f32 %v5301_v52, %v2703_v58  ;;  %v1899_v5 = vadd.f32 %v5297_v16, %v1798_v59 }
 0x39b   : > { %v2763_v15 = vadd.f32 %v2738_v10, %v5218_v9 }
 0x39c   : > { %v2706_v50 = vpop.xlane.xlu1 %2705 }
 0x39d   : > { %2789 = vst.msk [vmem:[%s5314_s16 + $0xa0] sm:$0xff] %vm2768_vm1, %v2763_v15  ;;  %v2739_v51 = vadd.f32 %v5301_v52, %v2706_v50 }
 0x39f   : > { %v2764_v42 = vadd.f32 %v2739_v51, %v5224_v38 }
 0x3a0   : > { %v2709_v21 = vpop.xlane.xlu0 %2708 }
 0x3a1   : > { %2790 = vst.msk [vmem:[%s5314_s16 + $0xa8] sm:$0xff] %vm2768_vm1, %v2764_v42  ;;  %v2740_v55 = vadd.f32 %v5301_v52, %v2709_v21 }
 0x3a3   : > { %v2765_v28 = vadd.f32 %v2740_v55, %v5230_v39 }
 0x3a4   : > { %v2712_v9 = vpop.xlane.xlu1 %2711 }
 0x3a5   : > { %2791 = vst.msk [vmem:[%s5314_s16 + $0xb0] sm:$0xff] %vm2768_vm1, %v2765_v28  ;;  %v2741_v38 = vadd.f32 %v5301_v52, %v2712_v9 }
 0x3a7   : > { %v2766_v11 = vadd.f32 %v2741_v38, %v1899_v5 }
 0x3a8   : > { %v2715_v36 = vpop.xlane.xlu0 %2714 }
 0x3a9   : > { %2792 = vst.msk [vmem:[%s5314_s16 + $0xb8] sm:$0xff] %vm2768_vm1, %v2766_v11  ;;  %v2742_v45 = vadd.f32 %v5301_v52, %v2715_v36 }
 0x3ab   : > { %v2767_v48 = vadd.f32 %v2742_v45, %v1900_v18 }
 0x3ad   : > { %2793 = vst.msk [vmem:[%s5314_s16 + $0xc0] sm:$0xff] %vm2768_vm1, %v2767_v48 }
 0x3ae PF: > { %s24_s25 = sadd.s32 1, %s3793_s25  }
 0x3af   : > { %p21_p1 = scmp.ge.s32.totalorder %s24_s25, 4  }
 0x3b1   :  { %23 = sbr.rel (!%p21_p1) target bundleno = 1 (0x1), region = 107 }
 0x3b8   :  { %2816 = vsyncpa [#allocation3], 1 }
 0x3b9   :  { %2818 = vsyncpa [#allocation3 + $0x1], 1 }

</bundles_post_ra>
